<compile_context>
chip_gen: v7x
topology: tpu7x:2x2x1
jax: 0.10.0
libtpu: 0.0.40
codegen_flags: <defaults>
</compile_context>

<pallas_src>
import math
import functools

import jax
import jax.numpy as jnp
from jax.experimental import pallas as pl
from jax.experimental.pallas import tpu as pltpu

_LN_EPS = 1e-12


# ------------------------------ hardware config -------------------------------

def _round_up(x, m):
    return (x + m - 1) // m * m


@functools.lru_cache(maxsize=None)
def _tpu_cfg():
    """Per-generation tiling / VMEM config (v5e/v6e: 128 MiB, v7x: 64 MiB)."""
    vmem = 64 * 1024 * 1024
    try:
        info = pltpu.get_tpu_info()
        vmem = int(getattr(info, "vmem_capacity_bytes", vmem))
    except Exception:
        pass
    if vmem >= 96 * 1024 * 1024:            # v5e / v6e (128 MiB physical)
        return dict(vmem_limit=96 * 1024 * 1024, tile_m=512,
                    tile_m_ce=1024, tile_v=2048, tile_i=1024)
    # v7x (64 MiB per core) or unknown: stay conservative.
    return dict(vmem_limit=40 * 1024 * 1024, tile_m=256,
                tile_m_ce=512, tile_v=1024, tile_i=512)


def _compiler_params(sem):
    return pltpu.CompilerParams(dimension_semantics=sem,
                                vmem_limit_bytes=_tpu_cfg()["vmem_limit"])


@functools.lru_cache(maxsize=None)
def _single_buffer_ok():
    """Probe whether pl.Buffered(1) (single-buffered grid-invariant operands)
    is supported by this Pallas build.  Must be called outside any jit trace."""
    try:
        def k(x_ref, o_ref):
            o_ref[...] = x_ref[...] + 1.0
        f = pl.pallas_call(
            k,
            out_shape=jax.ShapeDtypeStruct((8, 128), jnp.float32),
            grid=(1,),
            in_specs=[pl.BlockSpec((8, 128), lambda i: (0, 0),
                                   pipeline_mode=pl.Buffered(1))],
            out_specs=pl.BlockSpec((8, 128), lambda i: (0, 0)),
        )
        jax.block_until_ready(f(jnp.zeros((8, 128), jnp.float32)))
        return True
    except Exception:
        return False


def _const_spec(shape, index_map):
    """BlockSpec for a grid-invariant operand: single-buffered when supported."""
    if _single_buffer_ok():
        return pl.BlockSpec(shape, index_map, pipeline_mode=pl.Buffered(1))
    return pl.BlockSpec(shape, index_map)


# ------------------------------ tiling helpers --------------------------------

def _choose_tile_m(m, cap):
    """Largest row tile <= cap that divides m (multiple of 8); pad fallback."""
    if m <= cap:
        return m, m
    t = (cap // 8) * 8
    while t >= 8:
        if m % t == 0:
            return t, m
        t -= 8
    t = (cap // 8) * 8
    return t, _round_up(m, t)


def _choose_tile(n, cap, align):
    if n <= cap:
        return n, n
    t = (cap // align) * align
    while t >= align:
        if n % t == 0:
            return t, n
        t -= align
    t = (cap // align) * align
    return t, _round_up(n, t)


def _pad_rows(x, m_pad):
    m = x.shape[0]
    if m_pad == m:
        return x
    return jnp.pad(x, ((0, m_pad - m), (0, 0)))


def _choose_head_groups(n_heads, d_head):
    """Prefer a small head-group split whose lane width is a 128 multiple
    (megacore balance + smaller per-step VMEM); otherwise one group."""
    H = n_heads * d_head
    for ng in (2, 3, 4, 6):
        if n_heads % ng == 0 and (H // ng) % 128 == 0:
            return ng
    return 1


# ----------------------------- Pallas kernels ----------------------------------

def _ln_kernel(x_ref, g_ref, b_ref, o_ref, *, eps):
    y = x_ref[...].astype(jnp.float32)
    mu = jnp.mean(y, axis=-1, keepdims=True)
    var = jnp.mean(jnp.square(y - mu), axis=-1, keepdims=True)
    o_ref[...] = ((y - mu) * jax.lax.rsqrt(var + eps) * g_ref[...]
                  + b_ref[...]).astype(o_ref.dtype)


def layernorm(x, gamma, beta, *, out_dtype=jnp.bfloat16, eps=_LN_EPS):
    M, H = x.shape
    tile_m, m_pad = _choose_tile_m(M, _tpu_cfg()["tile_m"])
    xp = _pad_rows(x, m_pad)
    out = pl.pallas_call(
        functools.partial(_ln_kernel, eps=eps),
        out_shape=jax.ShapeDtypeStruct((m_pad, H), out_dtype),
        grid=(m_pad // tile_m,),
        in_specs=[
            pl.BlockSpec((tile_m, H), lambda i: (i, 0)),
            _const_spec((1, H), lambda i: (0, 0)),
            _const_spec((1, H), lambda i: (0, 0)),
        ],
        out_specs=pl.BlockSpec((tile_m, H), lambda i: (i, 0)),
        compiler_params=_compiler_params(("parallel",)),
    )(xp, gamma, beta)
    return out if m_pad == M else out[:M]


def _linear_res_ln_kernel(x_ref, w_ref, b_ref, r_ref, g_ref, be_ref, o_ref, *, eps):
    y = (jnp.dot(x_ref[...], w_ref[...], preferred_element_type=jnp.float32)
         + b_ref[...] + r_ref[...].astype(jnp.float32))
    mu = jnp.mean(y, axis=-1, keepdims=True)
    var = jnp.mean(jnp.square(y - mu), axis=-1, keepdims=True)
    o_ref[...] = ((y - mu) * jax.lax.rsqrt(var + eps) * g_ref[...]
                  + be_ref[...]).astype(o_ref.dtype)


def linear_residual_layernorm(x, w, b, residual, gamma, beta, *,
                              out_dtype=jnp.bfloat16, eps=_LN_EPS):
    """LN((x @ w + b) + residual) — matmul with fused bias/residual/LN epilogue."""
    M, K = x.shape
    N = w.shape[1]
    tile_m, m_pad = _choose_tile_m(M, _tpu_cfg()["tile_m"])
    xp = _pad_rows(x, m_pad)
    rp = _pad_rows(residual, m_pad)
    out = pl.pallas_call(
        functools.partial(_linear_res_ln_kernel, eps=eps),
        out_shape=jax.ShapeDtypeStruct((m_pad, N), out_dtype),
        grid=(m_pad // tile_m,),
        in_specs=[
            pl.BlockSpec((tile_m, K), lambda i: (i, 0)),
            _const_spec((K, N), lambda i: (0, 0)),      # weight: single-buffered
            _const_spec((1, N), lambda i: (0, 0)),
            pl.BlockSpec((tile_m, N), lambda i: (i, 0)),
            _const_spec((1, N), lambda i: (0, 0)),
            _const_spec((1, N), lambda i: (0, 0)),
        ],
        out_specs=pl.BlockSpec((tile_m, N), lambda i: (i, 0)),
        compiler_params=_compiler_params(("parallel",)),
    )(xp, w, b, rp, gamma, beta)
    return out if m_pad == M else out[:M]


def _ffn_res_ln_kernel(x_ref, w1_ref, b1_ref, w2_ref, b2_ref, g_ref, be_ref,
                       o_ref, acc_ref, *, eps):
    j = pl.program_id(1)

    @pl.when(j == 0)
    def _():
        acc_ref[...] = jnp.zeros_like(acc_ref)

    x = x_ref[...]
    h = jnp.dot(x, w1_ref[...], preferred_element_type=jnp.float32) + b1_ref[...]
    # TODO(synk): HF BERT uses exact erf-GELU; tanh approximation used here for
    # guaranteed Mosaic lowering (tiny numerical delta).
    h = jax.nn.gelu(h, approximate=True)
    acc_ref[...] += jnp.dot(h.astype(w2_ref.dtype), w2_ref[...],
                            preferred_element_type=jnp.float32)

    @pl.when(j == pl.num_programs(1) - 1)
    def _():
        y = acc_ref[...] + b2_ref[...] + x.astype(jnp.float32)
        mu = jnp.mean(y, axis=-1, keepdims=True)
        var = jnp.mean(jnp.square(y - mu), axis=-1, keepdims=True)
        o_ref[...] = ((y - mu) * jax.lax.rsqrt(var + eps) * g_ref[...]
                      + be_ref[...]).astype(o_ref.dtype)


def ffn_residual_layernorm(x, w1, b1, w2, b2, gamma, beta, *,
                           out_dtype=jnp.bfloat16, eps=_LN_EPS):
    """LN(gelu(x@w1+b1)@w2 + b2 + x), with the intermediate dim tiled so the
    FFN weights / GELU activations are never fully resident in VMEM."""
    M, H = x.shape
    I = w1.shape[1]
    cfg = _tpu_cfg()
    tile_m, m_pad = _choose_tile_m(M, cfg["tile_m"])
    tile_i, i_pad = _choose_tile(I, cfg["tile_i"], 128)
    xp = _pad_rows(x, m_pad)
    if i_pad != I:
        w1 = jnp.pad(w1, ((0, 0), (0, i_pad - I)))
        b1 = jnp.pad(b1, ((0, 0), (0, i_pad - I)))
        w2 = jnp.pad(w2, ((0, i_pad - I), (0, 0)))
    out = pl.pallas_call(
        functools.partial(_ffn_res_ln_kernel, eps=eps),
        out_shape=jax.ShapeDtypeStruct((m_pad, H), out_dtype),
        grid=(m_pad // tile_m, i_pad // tile_i),
        in_specs=[
            pl.BlockSpec((tile_m, H), lambda i, j: (i, 0)),
            pl.BlockSpec((H, tile_i), lambda i, j: (0, j)),
            pl.BlockSpec((1, tile_i), lambda i, j: (0, j)),
            pl.BlockSpec((tile_i, H), lambda i, j: (j, 0)),
            _const_spec((1, H), lambda i, j: (0, 0)),
            _const_spec((1, H), lambda i, j: (0, 0)),
            _const_spec((1, H), lambda i, j: (0, 0)),
        ],
        out_specs=pl.BlockSpec((tile_m, H), lambda i, j: (i, 0)),
        scratch_shapes=[pltpu.VMEM((tile_m, H), jnp.float32)],
        compiler_params=_compiler_params(("parallel", "arbitrary")),
    )(xp, w1, b1, w2, b2, gamma, beta)
    return out if m_pad == M else out[:M]


def _attn_kernel(sep_ref, has_ref, x_ref, w_ref, b_ref, o_ref, *,
                 scale, seq_len, heads_per_group, d_head):
    b = pl.program_id(0)
    sep = sep_ref[b]               # clamped first-SEP position (scalar, SMEM)
    full_vis = has_ref[b] == 0     # no SEP -> fully visible

    # Fused QKV projection for this (batch, head-group) on the MXU.
    x = x_ref[...]                                                  # (S, H) bf16
    qkv = (jnp.dot(x, w_ref[...], preferred_element_type=jnp.float32)
           + b_ref[...]).astype(jnp.bfloat16)                       # (S, 3*gH)

    # SFT mask built in-kernel from the scalar sep position (no HBM mask traffic)
    rows = jax.lax.broadcasted_iota(jnp.int32, (seq_len, seq_len), 0)
    cols = jax.lax.broadcasted_iota(jnp.int32, (seq_len, seq_len), 1)
    vis = (cols <= sep) | ((rows > sep) & (cols <= rows))
    vis = jnp.logical_or(vis, full_vis)

    gH = heads_per_group * d_head
    outs = []
    # TODO(synk): for very long sequences, additionally tile the kv axis
    # (flash-style).  Per-head processing already keeps only one (S,S) score
    # slab live at a time, which bounds the working set for BERT-scale S.
    for h in range(heads_per_group):
        lo = h * d_head
        q_h = qkv[:, lo:lo + d_head]
        k_h = qkv[:, gH + lo:gH + lo + d_head]
        v_h = qkv[:, 2 * gH + lo:2 * gH + lo + d_head]
        s = jax.lax.dot_general(q_h, k_h, (((1,), (1,)), ((), ())),
                                preferred_element_type=jnp.float32) * scale
        s = jnp.where(vis, s, -1e9)
        s = s - jnp.max(s, axis=-1, keepdims=True)
        p = jnp.exp(s)
        p = p * pl.reciprocal(jnp.sum(p, axis=-1, keepdims=True), approx=True)
        outs.append(jnp.dot(p.astype(v_h.dtype), v_h,
                            preferred_element_type=jnp.float32))
    o = outs[0] if len(outs) == 1 else jnp.concatenate(outs, axis=-1)
    o_ref[...] = o.astype(o_ref.dtype)       # lane-dense (S, gH) store


def attention(x, wqkv_g, bqkv_g, sep_pos, has_sep, *, batch, seq_len, d_head):
    """Fused QKV projection + SFT-masked multi-head attention.

    x: (B*S, H) bf16.  wqkv_g: (nG, H, 3*gH) head-grouped QKV weight.
    Returns (B*S, H) bf16 with heads merged in-kernel (lane-dense output)."""
    n_groups, H, three_gH = wqkv_g.shape
    gH = three_gH // 3
    heads_per_group = gH // d_head
    scale = 1.0 / math.sqrt(d_head)
    x3 = x.reshape(batch, seq_len, H)

    xs = pl.BlockSpec((None, seq_len, H), lambda b, g, sep, hs: (b, 0, 0))
    ws = pl.BlockSpec((None, H, three_gH), lambda b, g, sep, hs: (g, 0, 0))
    bs = pl.BlockSpec((None, 1, three_gH), lambda b, g, sep, hs: (g, 0, 0))
    os = pl.BlockSpec((None, seq_len, gH), lambda b, g, sep, hs: (b, 0, g))

    out = pl.pallas_call(
        functools.partial(_attn_kernel, scale=scale, seq_len=seq_len,
                          heads_per_group=heads_per_group, d_head=d_head),
        out_shape=jax.ShapeDtypeStruct((batch, seq_len, H), jnp.bfloat16),
        grid_spec=pltpu.PrefetchScalarGridSpec(
            num_scalar_prefetch=2,
            grid=(batch, n_groups),
            in_specs=[xs, ws, bs],
            out_specs=os,
        ),
        compiler_params=_compiler_params(("parallel", "parallel")),
    )(sep_pos, has_sep, x3, wqkv_g, bqkv_g)
    return out.reshape(batch * seq_len, H)


def _cls_ce_kernel(x_ref, w_ref, b_ref, lbl_ref, o_ref, m_sc, l_sc, ll_sc, *, tile_v):
    j = pl.program_id(1)

    @pl.when(j == 0)
    def _():
        m_sc[...] = jnp.full_like(m_sc, -jnp.inf)
        l_sc[...] = jnp.zeros_like(l_sc)
        ll_sc[...] = jnp.zeros_like(ll_sc)

    # logits for this vocab tile only — never written to HBM.  Keep f32:
    # padded-vocab bias of -1e30 must not be lowered to bf16.
    logits = (jnp.dot(x_ref[...], w_ref[...], preferred_element_type=jnp.float32)
              + b_ref[...])                                   # (tile_m, tile_v)

    ids = j * tile_v + jax.lax.broadcasted_iota(jnp.int32, logits.shape, 1)
    onehot = (ids == lbl_ref[...]).astype(jnp.float32)
    ll_sc[...] += jnp.sum(logits * onehot, axis=-1, keepdims=True)

    m_prev = m_sc[...]
    m_new = jnp.maximum(m_prev, jnp.max(logits, axis=-1, keepdims=True))
    l_sc[...] = (l_sc[...] * jnp.exp(m_prev - m_new)
                 + jnp.sum(jnp.exp(logits - m_new), axis=-1, keepdims=True))
    m_sc[...] = m_new

    @pl.when(j == pl.num_programs(1) - 1)
    def _():
        o_ref[...] = m_sc[...] + jnp.log(l_sc[...]) - ll_sc[...]


def classifier_cross_entropy(x, w, b, labels):
    """Per-token CE of softmax(x @ w + b) vs labels (unshifted, like PyTorch)."""
    M, H = x.shape
    V = w.shape[1]
    cfg = _tpu_cfg()
    tile_m, m_pad = _choose_tile_m(M, cfg["tile_m_ce"])
    tile_v, v_pad = _choose_tile(V, cfg["tile_v"], 128)

    xp = _pad_rows(x, m_pad)
    lbl = labels.reshape(-1, 1)
    if m_pad != M:
        lbl = jnp.pad(lbl, ((0, m_pad - M), (0, 0)))
    if v_pad != V:
        w = jnp.pad(w, ((0, 0), (0, v_pad - V)))
        b = jnp.pad(b, ((0, 0), (0, v_pad - V)), constant_values=-1e30)

    out = pl.pallas_call(
        functools.partial(_cls_ce_kernel, tile_v=tile_v),
        out_shape=jax.ShapeDtypeStruct((m_pad, 1), jnp.float32),
        grid=(m_pad // tile_m, v_pad // tile_v),
        in_specs=[
            pl.BlockSpec((tile_m, H), lambda i, j: (i, 0)),
            pl.BlockSpec((H, tile_v), lambda i, j: (0, j)),
            pl.BlockSpec((1, tile_v), lambda i, j: (0, j)),
            pl.BlockSpec((tile_m, 1), lambda i, j: (i, 0)),
        ],
        out_specs=pl.BlockSpec((tile_m, 1), lambda i, j: (i, 0)),
        scratch_shapes=[
            pltpu.VMEM((tile_m, 1), jnp.float32),   # running max
            pltpu.VMEM((tile_m, 1), jnp.float32),   # running sum-exp
            pltpu.VMEM((tile_m, 1), jnp.float32),   # label logit
        ],
        compiler_params=_compiler_params(("parallel", "arbitrary")),
    )(xp, w, b, lbl)
    out = out[:, 0]
    return out if m_pad == M else out[:M]


# --------------------------------- JAX glue ------------------------------------

def create_sep_info(input_ids, sep_token_id):
    B, S = input_ids.shape
    is_sep = input_ids == sep_token_id
    has_sep = jnp.any(is_sep, axis=1)
    first_sep = jnp.argmax(is_sep, axis=1)
    sep_clamped = jnp.minimum(first_sep, S - 2)
    return (sep_clamped.astype(jnp.int32),
            has_sep.astype(jnp.int32),
            first_sep.astype(jnp.int32))


def content_loss_mask(first_sep, has_sep, seq_len):
    pos = jnp.arange(seq_len)[None, :]
    after = pos > first_sep[:, None]
    return jnp.where(has_sep[:, None] > 0, after,
                     jnp.ones_like(after)).astype(jnp.float32)


def _group_qkv(wq, wk, wv, bq, bk, bv, n_heads, d_head, n_groups):
    """Lay out fused QKV weights per head-group: (nG, H, 3*gH) / (nG, 1, 3*gH)."""
    H = n_heads * d_head
    gH = (n_heads // n_groups) * d_head

    def g_w(w):   # (H, H) -> (nG, H, gH)
        return w.reshape(H, n_groups, gH).transpose(1, 0, 2)

    def g_b(b):   # (1, H) -> (nG, 1, gH)
        return b.reshape(1, n_groups, gH).transpose(1, 0, 2)

    wg = jnp.concatenate([g_w(wq), g_w(wk), g_w(wv)], axis=-1)
    bg = jnp.concatenate([g_b(bq), g_b(bk), g_b(bv)], axis=-1)
    return wg, bg


def init_params(key, vocab, hidden, n_layers, n_heads, intermediate, max_pos):
    d_head = hidden // n_heads
    n_groups = _choose_head_groups(n_heads, d_head)

    def nrm(k, shape, dtype=jnp.float32):
        return (0.02 * jax.random.normal(k, shape, dtype=jnp.float32)).astype(dtype)

    keys = jax.random.split(key, 4 + n_layers)
    params = {
        "word_emb": nrm(keys[0], (vocab, hidden), jnp.bfloat16),
        "pos_emb": nrm(keys[1], (max_pos, hidden), jnp.bfloat16),
        "type_emb": nrm(keys[2], (2, hidden), jnp.bfloat16),
        "emb_ln_g": jnp.ones((1, hidden), jnp.float32),
        "emb_ln_b": jnp.zeros((1, hidden), jnp.float32),
        "cls_w": nrm(keys[3], (hidden, vocab), jnp.bfloat16),
        "cls_b": jnp.zeros((1, vocab), jnp.float32),
        "layers": [],
    }
    for l in range(n_layers):
        lk = jax.random.split(keys[4 + l], 6)
        wq = nrm(lk[0], (hidden, hidden))
        wk = nrm(lk[1], (hidden, hidden))
        wv = nrm(lk[2], (hidden, hidden))
        zb = jnp.zeros((1, hidden), jnp.float32)
        wqkv_g, bqkv_g = _group_qkv(wq, wk, wv, zb, zb, zb,
                                    n_heads, d_head, n_groups)
        params["layers"].append({
            "wqkv_g": wqkv_g.astype(jnp.bfloat16),
            "bqkv_g": bqkv_g.astype(jnp.float32),
            "wo": nrm(lk[3], (hidden, hidden), jnp.bfloat16),
            "bo": jnp.zeros((1, hidden), jnp.float32),
            "ln1_g": jnp.ones((1, hidden), jnp.float32),
            "ln1_b": jnp.zeros((1, hidden), jnp.float32),
            "w1": nrm(lk[4], (hidden, intermediate), jnp.bfloat16),
            "b1": jnp.zeros((1, intermediate), jnp.float32),
            "w2": nrm(lk[5], (intermediate, hidden), jnp.bfloat16),
            "b2": jnp.zeros((1, hidden), jnp.float32),
            "ln2_g": jnp.ones((1, hidden), jnp.float32),
            "ln2_b": jnp.zeros((1, hidden), jnp.float32),
        })
    return params


def sft_forward(params, input_ids, labels, *, sep_token_id, num_heads):
    """Equivalent of SFTLanguageModel.forward(input_ids, labels) -> scalar loss."""
    B, S = input_ids.shape
    H = params["word_emb"].shape[1]
    dH = H // num_heads
    M = B * S

    sep_clamped, has_sep, first_sep = create_sep_info(input_ids, sep_token_id)

    # Embeddings (gather is glue), summed in bf16 to halve the LN HBM read;
    # LayerNorm statistics are computed in f32 inside the kernel.
    emb = (params["word_emb"][input_ids]
           + params["pos_emb"][None, :S, :]
           + params["type_emb"][0][None, None, :])
    x = layernorm(emb.reshape(M, H), params["emb_ln_g"], params["emb_ln_b"])

    for layer in params["layers"]:
        # Fused QKV + SFT-masked attention; heads split/merged in-kernel,
        # lane-dense (S, gH) output blocks, no (M,3H) HBM round trip.
        attn = attention(x, layer["wqkv_g"], layer["bqkv_g"],
                         sep_clamped, has_sep,
                         batch=B, seq_len=S, d_head=dH)
        x = linear_residual_layernorm(attn, layer["wo"], layer["bo"],
                                      x, layer["ln1_g"], layer["ln1_b"])
        x = ffn_residual_layernorm(x, layer["w1"], layer["b1"],
                                   layer["w2"], layer["b2"],
                                   layer["ln2_g"], layer["ln2_b"])

    # Fused classifier matmul + per-token cross entropy (logits never hit HBM),
    # then PyTorch-style per-sample masked aggregation (tiny, stays in JAX).
    ce = classifier_cross_entropy(x, params["cls_w"], params["cls_b"],
                                  labels.reshape(-1).astype(jnp.int32))
    ce = ce.reshape(B, S)

    cmask = content_loss_mask(first_sep, has_sep, S)
    loss_sum = jnp.sum(ce * cmask, axis=1)
    loss_cnt = jnp.sum(cmask, axis=1)
    per_sample = jnp.where(loss_cnt > 0, loss_sum / jnp.maximum(loss_cnt, 1.0), 0.0)
    valid = (loss_cnt > 0).astype(jnp.float32)
    n_valid = jnp.sum(valid)
    total = jnp.sum(per_sample * valid)
    loss = jnp.where(n_valid > 0, total / jnp.maximum(n_valid, 1.0), 0.0)
    return jnp.where(jnp.isnan(loss), 0.0, loss)


# ----------------------------------- main ---------------------------------------

if __name__ == "__main__":
    VOCAB = 128
    HIDDEN = 32
    N_LAYERS = 2
    N_HEADS = 2
    INTER = 4 * HIDDEN
    MAX_POS = 64
    SEP_ID = 102
    B, S = 2, 8

    # Populate hardware-probe caches eagerly (outside any jit trace) so that
    # the Buffered(1) probe / get_tpu_info query never run under tracing.
    _tpu_cfg()
    _single_buffer_ok()

    key = jax.random.PRNGKey(0)
    kp, ki, kl = jax.random.split(key, 3)

    params = init_params(kp, VOCAB, HIDDEN, N_LAYERS, N_HEADS, INTER, MAX_POS)

    input_ids = jax.random.randint(ki, (B, S), 0, VOCAB, dtype=jnp.int32)
    # avoid accidental SEP tokens, then plant one SEP per sample (title/content split)
    input_ids = jnp.where(input_ids == SEP_ID, input_ids + 1, input_ids)
    input_ids = input_ids.at[0, 3].set(SEP_ID).at[1, 4].set(SEP_ID)
    labels = jax.random.randint(kl, (B, S), 0, VOCAB, dtype=jnp.int32)

    fwd = jax.jit(
        functools.partial(sft_forward, sep_token_id=SEP_ID, num_heads=N_HEADS)
    )
    loss = fwd(params, input_ids, labels)
    loss = jax.block_until_ready(loss)
    assert loss.shape == () and jnp.isfinite(loss)
    print("KERNEL_OK")
</pallas_src>

<mosaic_0001>
module attributes {stable_mosaic.version = 11 : i64} {
  func.func @k(%arg0: i32, %arg1: memref<8x128xf32, #tpu.memory_space<vmem>>, %arg2: memref<8x128xf32, #tpu.memory_space<vmem>>) attributes {dimension_semantics = [#tpu.dimension_semantics<arbitrary>], iteration_bounds = array<i64: 1>, scalar_prefetch = 0 : i64, scratch_operands = 0 : i64, tpu.core_type = #tpu.core_type<tc>, window_params = [{pipeline_mode = #tpu.pipeline_mode<synchronous>, transform_indices = @transform_0, window_bounds = array<i64: 8, 128>}, {pipeline_mode = #tpu.pipeline_mode<synchronous>, transform_indices = @transform_1, window_bounds = array<i64: 8, 128>}]} {
    %c0 = arith.constant 0 : index
    %c0_0 = arith.constant 0 : index
    %0 = vector.load %arg1[%c0, %c0_0] : memref<8x128xf32, #tpu.memory_space<vmem>>, vector<8x128xf32>
    %cst = arith.constant 1.000000e+00 : f32
    %1 = vector.broadcast %cst : f32 to vector<8x128xf32>
    %2 = arith.addf %0, %1 : vector<8x128xf32>
    %c0_1 = arith.constant 0 : index
    %c0_2 = arith.constant 0 : index
    %3 = vector.load %arg2[%c0_1, %c0_2] : memref<8x128xf32, #tpu.memory_space<vmem>>, vector<8x128xf32>
    tpu.vector_store %arg2[%c0_1, %c0_2], %2 {strides = array<i32>} : memref<8x128xf32, #tpu.memory_space<vmem>>, vector<8x128xf32>,
    return
  }
  func.func @transform_0(%arg0: i32) -> (i32, i32) {
    %c0_i32 = arith.constant 0 : i32
    %c0_i32_0 = arith.constant 0 : i32
    %c0_i32_1 = arith.constant 0 : i32
    return %c0_i32, %c0_i32_0 : i32, i32
  }
  func.func @transform_1(%arg0: i32) -> (i32, i32) {
    %c0_i32 = arith.constant 0 : i32
    %c0_i32_0 = arith.constant 0 : i32
    %c0_i32_1 = arith.constant 0 : i32
    return %c0_i32, %c0_i32_0 : i32, i32
  }
}

module attributes {stable_mosaic.version = 11 : i64} {
  func.func @_ln_kernel(%arg0: i32, %arg1: memref<16x32xbf16, #tpu.memory_space<vmem>>, %arg2: memref<1x32xf32, #tpu.memory_space<vmem>>, %arg3: memref<1x32xf32, #tpu.memory_space<vmem>>, %arg4: memref<16x32xbf16, #tpu.memory_space<vmem>>) attributes {dimension_semantics = [#tpu.dimension_semantics<parallel>], iteration_bounds = array<i64: 1>, scalar_prefetch = 0 : i64, scratch_operands = 0 : i64, tpu.core_type = #tpu.core_type<tc>, window_params = [{transform_indices = @transform_0, window_bounds = array<i64: 16, 32>}, {pipeline_mode = #tpu.pipeline_mode<synchronous>, transform_indices = @transform_1, window_bounds = array<i64: 1, 32>}, {pipeline_mode = #tpu.pipeline_mode<synchronous>, transform_indices = @transform_2, window_bounds = array<i64: 1, 32>}, {transform_indices = @transform_3, window_bounds = array<i64: 16, 32>}]} {
    %c0 = arith.constant 0 : index
    %c0_0 = arith.constant 0 : index
    %0 = vector.load %arg1[%c0, %c0_0] : memref<16x32xbf16, #tpu.memory_space<vmem>>, vector<16x32xbf16>
    %1 = arith.extf %0 : vector<16x32xbf16> to vector<16x32xf32>
    %cst = arith.constant dense<0.000000e+00> : vector<16xf32>
    %2 = vector.multi_reduction <add>, %1, %cst [1] : vector<16x32xf32> to vector<16xf32>
    %3 = vector.shape_cast %2 : vector<16xf32> to vector<16x1xf32>
    %cst_1 = arith.constant 3.200000e+01 : f32
    %4 = vector.broadcast %cst_1 : f32 to vector<16x1xf32>
    %5 = arith.divf %3, %4 : vector<16x1xf32>
    %6 = vector.broadcast %5 : vector<16x1xf32> to vector<16x32xf32>
    %7 = arith.subf %1, %6 : vector<16x32xf32>
    %8 = arith.mulf %7, %7 : vector<16x32xf32>
    %cst_2 = arith.constant dense<0.000000e+00> : vector<16xf32>
    %9 = vector.multi_reduction <add>, %8, %cst_2 [1] : vector<16x32xf32> to vector<16xf32>
    %10 = vector.shape_cast %9 : vector<16xf32> to vector<16x1xf32>
    %cst_3 = arith.constant 3.200000e+01 : f32
    %11 = vector.broadcast %cst_3 : f32 to vector<16x1xf32>
    %12 = arith.divf %10, %11 : vector<16x1xf32>
    %13 = vector.broadcast %5 : vector<16x1xf32> to vector<16x32xf32>
    %14 = arith.subf %1, %13 : vector<16x32xf32>
    %cst_4 = arith.constant 9.99999996E-13 : f32
    %15 = vector.broadcast %cst_4 : f32 to vector<16x1xf32>
    %16 = arith.addf %12, %15 : vector<16x1xf32>
    %17 = math.rsqrt %16 : vector<16x1xf32>
    %18 = vector.broadcast %17 : vector<16x1xf32> to vector<16x32xf32>
    %19 = arith.mulf %14, %18 : vector<16x32xf32>
    %c0_5 = arith.constant 0 : index
    %c0_6 = arith.constant 0 : index
    %20 = vector.load %arg2[%c0_5, %c0_6] : memref<1x32xf32, #tpu.memory_space<vmem>>, vector<1x32xf32>
    %21 = vector.broadcast %20 : vector<1x32xf32> to vector<16x32xf32>
    %22 = arith.mulf %19, %21 : vector<16x32xf32>
    %c0_7 = arith.constant 0 : index
    %c0_8 = arith.constant 0 : index
    %23 = vector.load %arg3[%c0_7, %c0_8] : memref<1x32xf32, #tpu.memory_space<vmem>>, vector<1x32xf32>
    %24 = vector.broadcast %23 : vector<1x32xf32> to vector<16x32xf32>
    %25 = arith.addf %22, %24 : vector<16x32xf32>
    %26 = arith.truncf %25 : vector<16x32xf32> to vector<16x32xbf16>
    %c0_9 = arith.constant 0 : index
    %c0_10 = arith.constant 0 : index
    %27 = vector.load %arg4[%c0_9, %c0_10] : memref<16x32xbf16, #tpu.memory_space<vmem>>, vector<16x32xbf16>
    tpu.vector_store %arg4[%c0_9, %c0_10], %26 {strides = array<i32>} : memref<16x32xbf16, #tpu.memory_space<vmem>>, vector<16x32xbf16>,
    return
  }
  func.func @transform_0(%arg0: i32) -> (i32, i32) {
    %c0_i32 = arith.constant 0 : i32
    %c0_i32_0 = arith.constant 0 : i32
    return %arg0, %c0_i32 : i32, i32
  }
  func.func @transform_1(%arg0: i32) -> (i32, i32) {
    %c0_i32 = arith.constant 0 : i32
    %c0_i32_0 = arith.constant 0 : i32
    %c0_i32_1 = arith.constant 0 : i32
    return %c0_i32, %c0_i32_0 : i32, i32
  }
  func.func @transform_2(%arg0: i32) -> (i32, i32) {
    %c0_i32 = arith.constant 0 : i32
    %c0_i32_0 = arith.constant 0 : i32
    %c0_i32_1 = arith.constant 0 : i32
    return %c0_i32, %c0_i32_0 : i32, i32
  }
  func.func @transform_3(%arg0: i32) -> (i32, i32) {
    %c0_i32 = arith.constant 0 : i32
    %c0_i32_0 = arith.constant 0 : i32
    return %arg0, %c0_i32 : i32, i32
  }
}

module attributes {stable_mosaic.version = 11 : i64} {
  func.func @_attn_kernel(%arg0: i32, %arg1: i32, %arg2: memref<2xi32, #tpu.memory_space<smem>>, %arg3: memref<2xi32, #tpu.memory_space<smem>>, %arg4: memref<1x8x32xbf16, #tpu.memory_space<vmem>>, %arg5: memref<1x32x96xbf16, #tpu.memory_space<vmem>>, %arg6: memref<1x1x96xf32, #tpu.memory_space<vmem>>, %arg7: memref<1x8x32xbf16, #tpu.memory_space<vmem>>) attributes {dimension_semantics = [#tpu.dimension_semantics<parallel>, #tpu.dimension_semantics<parallel>], iteration_bounds = array<i64: 2, 1>, scalar_prefetch = 2 : i64, scratch_operands = 0 : i64, tpu.core_type = #tpu.core_type<tc>, window_params = [{transform_indices = @transform_0, window_bounds = array<i64: 1, 8, 32>}, {transform_indices = @transform_1, window_bounds = array<i64: 1, 32, 96>}, {transform_indices = @transform_2, window_bounds = array<i64: 1, 1, 96>}, {transform_indices = @transform_3, window_bounds = array<i64: 1, 8, 32>}]} {
    %0 = arith.index_cast %arg0 : i32 to index
    %1 = memref.load %arg2[%0] : memref<2xi32, #tpu.memory_space<smem>>
    %2 = arith.index_cast %arg0 : i32 to index
    %3 = memref.load %arg3[%2] : memref<2xi32, #tpu.memory_space<smem>>
    %c0_i32 = arith.constant 0 : i32
    %4 = arith.cmpi eq, %3, %c0_i32 : i32
    %c0 = arith.constant 0 : index
    %c0_0 = arith.constant 0 : index
    %c0_1 = arith.constant 0 : index
    %5 = vector.load %arg4[%c0, %c0_0, %c0_1] : memref<1x8x32xbf16, #tpu.memory_space<vmem>>, vector<1x8x32xbf16>
    %6 = vector.shape_cast %5 : vector<1x8x32xbf16> to vector<8x32xbf16>
    %c0_2 = arith.constant 0 : index
    %c0_3 = arith.constant 0 : index
    %c0_4 = arith.constant 0 : index
    %7 = vector.load %arg5[%c0_2, %c0_3, %c0_4] : memref<1x32x96xbf16, #tpu.memory_space<vmem>>, vector<1x32x96xbf16>
    %8 = vector.shape_cast %7 : vector<1x32x96xbf16> to vector<32x96xbf16>
    %cst = arith.constant dense<0.000000e+00> : vector<8x96xf32>
    %9 = tpu.matmul %6, %8, %cst {dimension_numbers = #tpu.dot_dimension_numbers<[1], [0], [0], [1], [0, 0, 1, 1], [], []>} : vector<8x32xbf16>, vector<32x96xbf16>, vector<8x96xf32> -> vector<8x96xf32>
    %c0_5 = arith.constant 0 : index
    %c0_6 = arith.constant 0 : index
    %c0_7 = arith.constant 0 : index
    %10 = vector.load %arg6[%c0_5, %c0_6, %c0_7] : memref<1x1x96xf32, #tpu.memory_space<vmem>>, vector<1x1x96xf32>
    %11 = vector.shape_cast %10 : vector<1x1x96xf32> to vector<1x96xf32>
    %12 = vector.broadcast %11 : vector<1x96xf32> to vector<8x96xf32>
    %13 = arith.addf %9, %12 : vector<8x96xf32>
    %14 = arith.truncf %13 : vector<8x96xf32> to vector<8x96xbf16>
    %15 = tpu.iota {dimensions = array<i32: 0>} : vector<8x8xi32>
    %16 = tpu.iota {dimensions = array<i32: 1>} : vector<8x8xi32>
    %17 = vector.broadcast %1 : i32 to vector<8x8xi32>
    %18 = arith.cmpi sle, %16, %17 : vector<8x8xi32>
    %19 = vector.broadcast %1 : i32 to vector<8x8xi32>
    %20 = arith.cmpi sgt, %15, %19 : vector<8x8xi32>
    %21 = arith.cmpi sle, %16, %15 : vector<8x8xi32>
    %22 = arith.andi %20, %21 : vector<8x8xi1>
    %23 = arith.ori %18, %22 : vector<8x8xi1>
    %24 = vector.broadcast %4 : i1 to vector<8x8xi1>
    %25 = arith.ori %23, %24 : vector<8x8xi1>
    %26 = vector.extract_strided_slice %14 {offsets = [0, 0], sizes = [8, 16], strides = [1, 1]} : vector<8x96xbf16> to vector<8x16xbf16>
    %27 = vector.extract_strided_slice %14 {offsets = [0, 32], sizes = [8, 16], strides = [1, 1]} : vector<8x96xbf16> to vector<8x16xbf16>
    %28 = vector.extract_strided_slice %14 {offsets = [0, 64], sizes = [8, 16], strides = [1, 1]} : vector<8x96xbf16> to vector<8x16xbf16>
    %cst_8 = arith.constant dense<0.000000e+00> : vector<8x8xf32>
    %29 = tpu.matmul %26, %27, %cst_8 {dimension_numbers = #tpu.dot_dimension_numbers<[1], [1], [0], [0], [0, 0, 1, 0], [], []>} : vector<8x16xbf16>, vector<8x16xbf16>, vector<8x8xf32> -> vector<8x8xf32>
    %cst_9 = arith.constant 2.500000e-01 : f32
    %30 = vector.broadcast %cst_9 : f32 to vector<8x8xf32>
    %31 = arith.mulf %29, %30 : vector<8x8xf32>
    %cst_10 = arith.constant -1.000000e+09 : f32
    %32 = vector.broadcast %cst_10 : f32 to vector<8x8xf32>
    %33 = arith.select %25, %31, %32 : vector<8x8xi1>, vector<8x8xf32>
    %cst_11 = arith.constant dense<0xFF800000> : vector<8xf32>
    %34 = vector.multi_reduction <maximumf>, %33, %cst_11 [1] : vector<8x8xf32> to vector<8xf32>
    %35 = vector.shape_cast %34 : vector<8xf32> to vector<8x1xf32>
    %36 = vector.broadcast %35 : vector<8x1xf32> to vector<8x8xf32>
    %37 = arith.subf %33, %36 : vector<8x8xf32>
    %38 = math.exp %37 : vector<8x8xf32>
    %cst_12 = arith.constant dense<0.000000e+00> : vector<8xf32>
    %39 = vector.multi_reduction <add>, %38, %cst_12 [1] : vector<8x8xf32> to vector<8xf32>
    %40 = vector.shape_cast %39 : vector<8xf32> to vector<8x1xf32>
    %41 = tpu.reciprocal %40 {approx = true} : vector<8x1xf32> -> vector<8x1xf32>
    %42 = vector.broadcast %41 : vector<8x1xf32> to vector<8x8xf32>
    %43 = arith.mulf %38, %42 : vector<8x8xf32>
    %44 = arith.truncf %43 : vector<8x8xf32> to vector<8x8xbf16>
    %cst_13 = arith.constant dense<0.000000e+00> : vector<8x16xf32>
    %45 = tpu.matmul %44, %28, %cst_13 {dimension_numbers = #tpu.dot_dimension_numbers<[1], [0], [0], [1], [0, 0, 1, 1], [], []>} : vector<8x8xbf16>, vector<8x16xbf16>, vector<8x16xf32> -> vector<8x16xf32>
    %46 = vector.extract_strided_slice %14 {offsets = [0, 16], sizes = [8, 16], strides = [1, 1]} : vector<8x96xbf16> to vector<8x16xbf16>
    %47 = vector.extract_strided_slice %14 {offsets = [0, 48], sizes = [8, 16], strides = [1, 1]} : vector<8x96xbf16> to vector<8x16xbf16>
    %48 = vector.extract_strided_slice %14 {offsets = [0, 80], sizes = [8, 16], strides = [1, 1]} : vector<8x96xbf16> to vector<8x16xbf16>
    %cst_14 = arith.constant dense<0.000000e+00> : vector<8x8xf32>
    %49 = tpu.matmul %46, %47, %cst_14 {dimension_numbers = #tpu.dot_dimension_numbers<[1], [1], [0], [0], [0, 0, 1, 0], [], []>} : vector<8x16xbf16>, vector<8x16xbf16>, vector<8x8xf32> -> vector<8x8xf32>
    %cst_15 = arith.constant 2.500000e-01 : f32
    %50 = vector.broadcast %cst_15 : f32 to vector<8x8xf32>
    %51 = arith.mulf %49, %50 : vector<8x8xf32>
    %cst_16 = arith.constant -1.000000e+09 : f32
    %52 = vector.broadcast %cst_16 : f32 to vector<8x8xf32>
    %53 = arith.select %25, %51, %52 : vector<8x8xi1>, vector<8x8xf32>
    %cst_17 = arith.constant dense<0xFF800000> : vector<8xf32>
    %54 = vector.multi_reduction <maximumf>, %53, %cst_17 [1] : vector<8x8xf32> to vector<8xf32>
    %55 = vector.shape_cast %54 : vector<8xf32> to vector<8x1xf32>
    %56 = vector.broadcast %55 : vector<8x1xf32> to vector<8x8xf32>
    %57 = arith.subf %53, %56 : vector<8x8xf32>
    %58 = math.exp %57 : vector<8x8xf32>
    %cst_18 = arith.constant dense<0.000000e+00> : vector<8xf32>
    %59 = vector.multi_reduction <add>, %58, %cst_18 [1] : vector<8x8xf32> to vector<8xf32>
    %60 = vector.shape_cast %59 : vector<8xf32> to vector<8x1xf32>
    %61 = tpu.reciprocal %60 {approx = true} : vector<8x1xf32> -> vector<8x1xf32>
    %62 = vector.broadcast %61 : vector<8x1xf32> to vector<8x8xf32>
    %63 = arith.mulf %58, %62 : vector<8x8xf32>
    %64 = arith.truncf %63 : vector<8x8xf32> to vector<8x8xbf16>
    %cst_19 = arith.constant dense<0.000000e+00> : vector<8x16xf32>
    %65 = tpu.matmul %64, %48, %cst_19 {dimension_numbers = #tpu.dot_dimension_numbers<[1], [0], [0], [1], [0, 0, 1, 1], [], []>} : vector<8x8xbf16>, vector<8x16xbf16>, vector<8x16xf32> -> vector<8x16xf32>
    %66 = tpu.concatenate %45, %65 in 1 : vector<8x16xf32>, vector<8x16xf32> -> vector<8x32xf32>
    %67 = arith.truncf %66 : vector<8x32xf32> to vector<8x32xbf16>
    %c0_20 = arith.constant 0 : index
    %c0_21 = arith.constant 0 : index
    %c0_22 = arith.constant 0 : index
    %68 = vector.load %arg7[%c0_20, %c0_21, %c0_22] : memref<1x8x32xbf16, #tpu.memory_space<vmem>>, vector<1x8x32xbf16>
    %69 = vector.shape_cast %68 : vector<1x8x32xbf16> to vector<8x32xbf16>
    %70 = vector.shape_cast %67 : vector<8x32xbf16> to vector<1x8x32xbf16>
    tpu.vector_store %arg7[%c0_20, %c0_21, %c0_22], %70 {strides = array<i32>} : memref<1x8x32xbf16, #tpu.memory_space<vmem>>, vector<1x8x32xbf16>,
    return
  }
  func.func @transform_0(%arg0: i32, %arg1: i32, %arg2: memref<2xi32, #tpu.memory_space<smem>>, %arg3: memref<2xi32, #tpu.memory_space<smem>>) -> (i32, i32, i32) {
    %c0_i32 = arith.constant 0 : i32
    %c0_i32_0 = arith.constant 0 : i32
    %c0_i32_1 = arith.constant 0 : i32
    return %arg0, %c0_i32, %c0_i32_0 : i32, i32, i32
  }
  func.func @transform_1(%arg0: i32, %arg1: i32, %arg2: memref<2xi32, #tpu.memory_space<smem>>, %arg3: memref<2xi32, #tpu.memory_space<smem>>) -> (i32, i32, i32) {
    %c0_i32 = arith.constant 0 : i32
    %c0_i32_0 = arith.constant 0 : i32
    %c0_i32_1 = arith.constant 0 : i32
    return %arg1, %c0_i32, %c0_i32_0 : i32, i32, i32
  }
  func.func @transform_2(%arg0: i32, %arg1: i32, %arg2: memref<2xi32, #tpu.memory_space<smem>>, %arg3: memref<2xi32, #tpu.memory_space<smem>>) -> (i32, i32, i32) {
    %c0_i32 = arith.constant 0 : i32
    %c0_i32_0 = arith.constant 0 : i32
    %c0_i32_1 = arith.constant 0 : i32
    return %arg1, %c0_i32, %c0_i32_0 : i32, i32, i32
  }
  func.func @transform_3(%arg0: i32, %arg1: i32, %arg2: memref<2xi32, #tpu.memory_space<smem>>, %arg3: memref<2xi32, #tpu.memory_space<smem>>) -> (i32, i32, i32) {
    %c0_i32 = arith.constant 0 : i32
    %c0_i32_0 = arith.constant 0 : i32
    return %arg0, %c0_i32, %arg1 : i32, i32, i32
  }
}

module attributes {stable_mosaic.version = 11 : i64} {
  func.func @_ffn_res_ln_kernel(%arg0: i32, %arg1: i32, %arg2: memref<16x32xbf16, #tpu.memory_space<vmem>>, %arg3: memref<32x128xbf16, #tpu.memory_space<vmem>>, %arg4: memref<1x128xf32, #tpu.memory_space<vmem>>, %arg5: memref<128x32xbf16, #tpu.memory_space<vmem>>, %arg6: memref<1x32xf32, #tpu.memory_space<vmem>>, %arg7: memref<1x32xf32, #tpu.memory_space<vmem>>, %arg8: memref<1x32xf32, #tpu.memory_space<vmem>>, %arg9: memref<16x32xbf16, #tpu.memory_space<vmem>>, %arg10: memref<16x32xf32, #tpu.memory_space<vmem>>) attributes {dimension_semantics = [#tpu.dimension_semantics<parallel>, #tpu.dimension_semantics<arbitrary>], iteration_bounds = array<i64: 1, 1>, scalar_prefetch = 0 : i64, scratch_operands = 1 : i64, tpu.core_type = #tpu.core_type<tc>, window_params = [{transform_indices = @transform_0, window_bounds = array<i64: 16, 32>}, {transform_indices = @transform_1, window_bounds = array<i64: 32, 128>}, {transform_indices = @transform_2, window_bounds = array<i64: 1, 128>}, {transform_indices = @transform_3, window_bounds = array<i64: 128, 32>}, {pipeline_mode = #tpu.pipeline_mode<synchronous>, transform_indices = @transform_4, window_bounds = array<i64: 1, 32>}, {pipeline_mode = #tpu.pipeline_mode<synchronous>, transform_indices = @transform_5, window_bounds = array<i64: 1, 32>}, {pipeline_mode = #tpu.pipeline_mode<synchronous>, transform_indices = @transform_6, window_bounds = array<i64: 1, 32>}, {transform_indices = @transform_7, window_bounds = array<i64: 16, 32>}]} {
    %c0_i32 = arith.constant 0 : i32
    %0 = arith.cmpi eq, %arg1, %c0_i32 : i32
    %1 = arith.extui %0 : i1 to i32
    %c0_i32_0 = arith.constant 0 : i32
    %2 = arith.cmpi ne, %1, %c0_i32_0 : i32
    scf.if %2 {
      %cst_19 = arith.constant 0.000000e+00 : f32
      %31 = vector.broadcast %cst_19 : f32 to vector<16x32xf32>
      %c0_20 = arith.constant 0 : index
      %c0_21 = arith.constant 0 : index
      %32 = vector.load %arg10[%c0_20, %c0_21] : memref<16x32xf32, #tpu.memory_space<vmem>>, vector<16x32xf32>
      tpu.vector_store %arg10[%c0_20, %c0_21], %31 {strides = array<i32>} : memref<16x32xf32, #tpu.memory_space<vmem>>, vector<16x32xf32>,
    } else {
    }
    %c0 = arith.constant 0 : index
    %c0_1 = arith.constant 0 : index
    %3 = vector.load %arg2[%c0, %c0_1] : memref<16x32xbf16, #tpu.memory_space<vmem>>, vector<16x32xbf16>
    %c0_2 = arith.constant 0 : index
    %c0_3 = arith.constant 0 : index
    %4 = vector.load %arg3[%c0_2, %c0_3] : memref<32x128xbf16, #tpu.memory_space<vmem>>, vector<32x128xbf16>
    %cst = arith.constant dense<0.000000e+00> : vector<16x128xf32>
    %5 = tpu.matmul %3, %4, %cst {dimension_numbers = #tpu.dot_dimension_numbers<[1], [0], [0], [1], [0, 0, 1, 1], [], []>} : vector<16x32xbf16>, vector<32x128xbf16>, vector<16x128xf32> -> vector<16x128xf32>
    %c0_4 = arith.constant 0 : index
    %c0_5 = arith.constant 0 : index
    %6 = vector.load %arg4[%c0_4, %c0_5] : memref<1x128xf32, #tpu.memory_space<vmem>>, vector<1x128xf32>
    %7 = vector.broadcast %6 : vector<1x128xf32> to vector<16x128xf32>
    %8 = arith.addf %5, %7 : vector<16x128xf32>
    %9 = arith.mulf %8, %8 : vector<16x128xf32>
    %10 = arith.mulf %8, %9 : vector<16x128xf32>
    %cst_6 = arith.constant 4.471500e-02 : f32
    %11 = vector.broadcast %cst_6 : f32 to vector<16x128xf32>
    %12 = arith.mulf %11, %10 : vector<16x128xf32>
    %13 = arith.addf %8, %12 : vector<16x128xf32>
    %cst_7 = arith.constant 0.797884583 : f32
    %14 = vector.broadcast %cst_7 : f32 to vector<16x128xf32>
    %15 = arith.mulf %14, %13 : vector<16x128xf32>
    %16 = math.tanh %15 : vector<16x128xf32>
    %cst_8 = arith.constant 1.000000e+00 : f32
    %17 = vector.broadcast %cst_8 : f32 to vector<16x128xf32>
    %18 = arith.addf %17, %16 : vector<16x128xf32>
    %cst_9 = arith.constant 5.000000e-01 : f32
    %19 = vector.broadcast %cst_9 : f32 to vector<16x128xf32>
    %20 = arith.mulf %19, %18 : vector<16x128xf32>
    %21 = arith.mulf %8, %20 : vector<16x128xf32>
    %c0_10 = arith.constant 0 : index
    %c0_11 = arith.constant 0 : index
    %22 = vector.load %arg10[%c0_10, %c0_11] : memref<16x32xf32, #tpu.memory_space<vmem>>, vector<16x32xf32>
    %23 = arith.truncf %21 : vector<16x128xf32> to vector<16x128xbf16>
    %c0_12 = arith.constant 0 : index
    %c0_13 = arith.constant 0 : index
    %24 = vector.load %arg5[%c0_12, %c0_13] : memref<128x32xbf16, #tpu.memory_space<vmem>>, vector<128x32xbf16>
    %cst_14 = arith.constant dense<0.000000e+00> : vector<16x32xf32>
    %25 = tpu.matmul %23, %24, %cst_14 {dimension_numbers = #tpu.dot_dimension_numbers<[1], [0], [0], [1], [0, 0, 1, 1], [], []>} : vector<16x128xbf16>, vector<128x32xbf16>, vector<16x32xf32> -> vector<16x32xf32>
    %26 = arith.addf %22, %25 : vector<16x32xf32>
    %c0_15 = arith.constant 0 : index
    %c0_16 = arith.constant 0 : index
    %27 = vector.load %arg10[%c0_15, %c0_16] : memref<16x32xf32, #tpu.memory_space<vmem>>, vector<16x32xf32>
    tpu.vector_store %arg10[%c0_15, %c0_16], %26 {strides = array<i32>} : memref<16x32xf32, #tpu.memory_space<vmem>>, vector<16x32xf32>,
    %c0_i32_17 = arith.constant 0 : i32
    %28 = arith.cmpi eq, %arg1, %c0_i32_17 : i32
    %29 = arith.extui %28 : i1 to i32
    %c0_i32_18 = arith.constant 0 : i32
    %30 = arith.cmpi ne, %29, %c0_i32_18 : i32
    scf.if %30 {
      %c0_19 = arith.constant 0 : index
      %c0_20 = arith.constant 0 : index
      %31 = vector.load %arg10[%c0_19, %c0_20] : memref<16x32xf32, #tpu.memory_space<vmem>>, vector<16x32xf32>
      %c0_21 = arith.constant 0 : index
      %c0_22 = arith.constant 0 : index
      %32 = vector.load %arg6[%c0_21, %c0_22] : memref<1x32xf32, #tpu.memory_space<vmem>>, vector<1x32xf32>
      %33 = vector.broadcast %32 : vector<1x32xf32> to vector<16x32xf32>
      %34 = arith.addf %31, %33 : vector<16x32xf32>
      %35 = arith.extf %3 : vector<16x32xbf16> to vector<16x32xf32>
      %36 = arith.addf %34, %35 : vector<16x32xf32>
      %cst_23 = arith.constant dense<0.000000e+00> : vector<16xf32>
      %37 = vector.multi_reduction <add>, %36, %cst_23 [1] : vector<16x32xf32> to vector<16xf32>
      %38 = vector.shape_cast %37 : vector<16xf32> to vector<16x1xf32>
      %cst_24 = arith.constant 3.200000e+01 : f32
      %39 = vector.broadcast %cst_24 : f32 to vector<16x1xf32>
      %40 = arith.divf %38, %39 : vector<16x1xf32>
      %41 = vector.broadcast %40 : vector<16x1xf32> to vector<16x32xf32>
      %42 = arith.subf %36, %41 : vector<16x32xf32>
      %43 = arith.mulf %42, %42 : vector<16x32xf32>
      %cst_25 = arith.constant dense<0.000000e+00> : vector<16xf32>
      %44 = vector.multi_reduction <add>, %43, %cst_25 [1] : vector<16x32xf32> to vector<16xf32>
      %45 = vector.shape_cast %44 : vector<16xf32> to vector<16x1xf32>
      %cst_26 = arith.constant 3.200000e+01 : f32
      %46 = vector.broadcast %cst_26 : f32 to vector<16x1xf32>
      %47 = arith.divf %45, %46 : vector<16x1xf32>
      %48 = vector.broadcast %40 : vector<16x1xf32> to vector<16x32xf32>
      %49 = arith.subf %36, %48 : vector<16x32xf32>
      %cst_27 = arith.constant 9.99999996E-13 : f32
      %50 = vector.broadcast %cst_27 : f32 to vector<16x1xf32>
      %51 = arith.addf %47, %50 : vector<16x1xf32>
      %52 = math.rsqrt %51 : vector<16x1xf32>
      %53 = vector.broadcast %52 : vector<16x1xf32> to vector<16x32xf32>
      %54 = arith.mulf %49, %53 : vector<16x32xf32>
      %c0_28 = arith.constant 0 : index
      %c0_29 = arith.constant 0 : index
      %55 = vector.load %arg7[%c0_28, %c0_29] : memref<1x32xf32, #tpu.memory_space<vmem>>, vector<1x32xf32>
      %56 = vector.broadcast %55 : vector<1x32xf32> to vector<16x32xf32>
      %57 = arith.mulf %54, %56 : vector<16x32xf32>
      %c0_30 = arith.constant 0 : index
      %c0_31 = arith.constant 0 : index
      %58 = vector.load %arg8[%c0_30, %c0_31] : memref<1x32xf32, #tpu.memory_space<vmem>>, vector<1x32xf32>
      %59 = vector.broadcast %58 : vector<1x32xf32> to vector<16x32xf32>
      %60 = arith.addf %57, %59 : vector<16x32xf32>
      %61 = arith.truncf %60 : vector<16x32xf32> to vector<16x32xbf16>
      %c0_32 = arith.constant 0 : index
      %c0_33 = arith.constant 0 : index
      %62 = vector.load %arg9[%c0_32, %c0_33] : memref<16x32xbf16, #tpu.memory_space<vmem>>, vector<16x32xbf16>
      tpu.vector_store %arg9[%c0_32, %c0_33], %61 {strides = array<i32>} : memref<16x32xbf16, #tpu.memory_space<vmem>>, vector<16x32xbf16>,
    } else {
    }
    return
  }
  func.func @transform_0(%arg0: i32, %arg1: i32) -> (i32, i32) {
    %c0_i32 = arith.constant 0 : i32
    %c0_i32_0 = arith.constant 0 : i32
    return %arg0, %c0_i32 : i32, i32
  }
  func.func @transform_1(%arg0: i32, %arg1: i32) -> (i32, i32) {
    %c0_i32 = arith.constant 0 : i32
    %c0_i32_0 = arith.constant 0 : i32
    return %c0_i32, %arg1 : i32, i32
  }
  func.func @transform_2(%arg0: i32, %arg1: i32) -> (i32, i32) {
    %c0_i32 = arith.constant 0 : i32
    %c0_i32_0 = arith.constant 0 : i32
    return %c0_i32, %arg1 : i32, i32
  }
  func.func @transform_3(%arg0: i32, %arg1: i32) -> (i32, i32) {
    %c0_i32 = arith.constant 0 : i32
    %c0_i32_0 = arith.constant 0 : i32
    return %arg1, %c0_i32 : i32, i32
  }
  func.func @transform_4(%arg0: i32, %arg1: i32) -> (i32, i32) {
    %c0_i32 = arith.constant 0 : i32
    %c0_i32_0 = arith.constant 0 : i32
    %c0_i32_1 = arith.constant 0 : i32
    return %c0_i32, %c0_i32_0 : i32, i32
  }
  func.func @transform_5(%arg0: i32, %arg1: i32) -> (i32, i32) {
    %c0_i32 = arith.constant 0 : i32
    %c0_i32_0 = arith.constant 0 : i32
    %c0_i32_1 = arith.constant 0 : i32
    return %c0_i32, %c0_i32_0 : i32, i32
  }
  func.func @transform_6(%arg0: i32, %arg1: i32) -> (i32, i32) {
    %c0_i32 = arith.constant 0 : i32
    %c0_i32_0 = arith.constant 0 : i32
    %c0_i32_1 = arith.constant 0 : i32
    return %c0_i32, %c0_i32_0 : i32, i32
  }
  func.func @transform_7(%arg0: i32, %arg1: i32) -> (i32, i32) {
    %c0_i32 = arith.constant 0 : i32
    %c0_i32_0 = arith.constant 0 : i32
    return %arg0, %c0_i32 : i32, i32
  }
}

module attributes {stable_mosaic.version = 11 : i64} {
  func.func @_linear_res_ln_kernel(%arg0: i32, %arg1: memref<16x32xbf16, #tpu.memory_space<vmem>>, %arg2: memref<32x32xbf16, #tpu.memory_space<vmem>>, %arg3: memref<1x32xf32, #tpu.memory_space<vmem>>, %arg4: memref<16x32xbf16, #tpu.memory_space<vmem>>, %arg5: memref<1x32xf32, #tpu.memory_space<vmem>>, %arg6: memref<1x32xf32, #tpu.memory_space<vmem>>, %arg7: memref<16x32xbf16, #tpu.memory_space<vmem>>) attributes {dimension_semantics = [#tpu.dimension_semantics<parallel>], iteration_bounds = array<i64: 1>, scalar_prefetch = 0 : i64, scratch_operands = 0 : i64, tpu.core_type = #tpu.core_type<tc>, window_params = [{transform_indices = @transform_0, window_bounds = array<i64: 16, 32>}, {pipeline_mode = #tpu.pipeline_mode<synchronous>, transform_indices = @transform_1, window_bounds = array<i64: 32, 32>}, {pipeline_mode = #tpu.pipeline_mode<synchronous>, transform_indices = @transform_2, window_bounds = array<i64: 1, 32>}, {transform_indices = @transform_3, window_bounds = array<i64: 16, 32>}, {pipeline_mode = #tpu.pipeline_mode<synchronous>, transform_indices = @transform_4, window_bounds = array<i64: 1, 32>}, {pipeline_mode = #tpu.pipeline_mode<synchronous>, transform_indices = @transform_5, window_bounds = array<i64: 1, 32>}, {transform_indices = @transform_6, window_bounds = array<i64: 16, 32>}]} {
    %c0 = arith.constant 0 : index
    %c0_0 = arith.constant 0 : index
    %0 = vector.load %arg1[%c0, %c0_0] : memref<16x32xbf16, #tpu.memory_space<vmem>>, vector<16x32xbf16>
    %c0_1 = arith.constant 0 : index
    %c0_2 = arith.constant 0 : index
    %1 = vector.load %arg2[%c0_1, %c0_2] : memref<32x32xbf16, #tpu.memory_space<vmem>>, vector<32x32xbf16>
    %cst = arith.constant dense<0.000000e+00> : vector<16x32xf32>
    %2 = tpu.matmul %0, %1, %cst {dimension_numbers = #tpu.dot_dimension_numbers<[1], [0], [0], [1], [0, 0, 1, 1], [], []>} : vector<16x32xbf16>, vector<32x32xbf16>, vector<16x32xf32> -> vector<16x32xf32>
    %c0_3 = arith.constant 0 : index
    %c0_4 = arith.constant 0 : index
    %3 = vector.load %arg3[%c0_3, %c0_4] : memref<1x32xf32, #tpu.memory_space<vmem>>, vector<1x32xf32>
    %4 = vector.broadcast %3 : vector<1x32xf32> to vector<16x32xf32>
    %5 = arith.addf %2, %4 : vector<16x32xf32>
    %c0_5 = arith.constant 0 : index
    %c0_6 = arith.constant 0 : index
    %6 = vector.load %arg4[%c0_5, %c0_6] : memref<16x32xbf16, #tpu.memory_space<vmem>>, vector<16x32xbf16>
    %7 = arith.extf %6 : vector<16x32xbf16> to vector<16x32xf32>
    %8 = arith.addf %5, %7 : vector<16x32xf32>
    %cst_7 = arith.constant dense<0.000000e+00> : vector<16xf32>
    %9 = vector.multi_reduction <add>, %8, %cst_7 [1] : vector<16x32xf32> to vector<16xf32>
    %10 = vector.shape_cast %9 : vector<16xf32> to vector<16x1xf32>
    %cst_8 = arith.constant 3.200000e+01 : f32
    %11 = vector.broadcast %cst_8 : f32 to vector<16x1xf32>
    %12 = arith.divf %10, %11 : vector<16x1xf32>
    %13 = vector.broadcast %12 : vector<16x1xf32> to vector<16x32xf32>
    %14 = arith.subf %8, %13 : vector<16x32xf32>
    %15 = arith.mulf %14, %14 : vector<16x32xf32>
    %cst_9 = arith.constant dense<0.000000e+00> : vector<16xf32>
    %16 = vector.multi_reduction <add>, %15, %cst_9 [1] : vector<16x32xf32> to vector<16xf32>
    %17 = vector.shape_cast %16 : vector<16xf32> to vector<16x1xf32>
    %cst_10 = arith.constant 3.200000e+01 : f32
    %18 = vector.broadcast %cst_10 : f32 to vector<16x1xf32>
    %19 = arith.divf %17, %18 : vector<16x1xf32>
    %20 = vector.broadcast %12 : vector<16x1xf32> to vector<16x32xf32>
    %21 = arith.subf %8, %20 : vector<16x32xf32>
    %cst_11 = arith.constant 9.99999996E-13 : f32
    %22 = vector.broadcast %cst_11 : f32 to vector<16x1xf32>
    %23 = arith.addf %19, %22 : vector<16x1xf32>
    %24 = math.rsqrt %23 : vector<16x1xf32>
    %25 = vector.broadcast %24 : vector<16x1xf32> to vector<16x32xf32>
    %26 = arith.mulf %21, %25 : vector<16x32xf32>
    %c0_12 = arith.constant 0 : index
    %c0_13 = arith.constant 0 : index
    %27 = vector.load %arg5[%c0_12, %c0_13] : memref<1x32xf32, #tpu.memory_space<vmem>>, vector<1x32xf32>
    %28 = vector.broadcast %27 : vector<1x32xf32> to vector<16x32xf32>
    %29 = arith.mulf %26, %28 : vector<16x32xf32>
    %c0_14 = arith.constant 0 : index
    %c0_15 = arith.constant 0 : index
    %30 = vector.load %arg6[%c0_14, %c0_15] : memref<1x32xf32, #tpu.memory_space<vmem>>, vector<1x32xf32>
    %31 = vector.broadcast %30 : vector<1x32xf32> to vector<16x32xf32>
    %32 = arith.addf %29, %31 : vector<16x32xf32>
    %33 = arith.truncf %32 : vector<16x32xf32> to vector<16x32xbf16>
    %c0_16 = arith.constant 0 : index
    %c0_17 = arith.constant 0 : index
    %34 = vector.load %arg7[%c0_16, %c0_17] : memref<16x32xbf16, #tpu.memory_space<vmem>>, vector<16x32xbf16>
    tpu.vector_store %arg7[%c0_16, %c0_17], %33 {strides = array<i32>} : memref<16x32xbf16, #tpu.memory_space<vmem>>, vector<16x32xbf16>,
    return
  }
  func.func @transform_0(%arg0: i32) -> (i32, i32) {
    %c0_i32 = arith.constant 0 : i32
    %c0_i32_0 = arith.constant 0 : i32
    return %arg0, %c0_i32 : i32, i32
  }
  func.func @transform_1(%arg0: i32) -> (i32, i32) {
    %c0_i32 = arith.constant 0 : i32
    %c0_i32_0 = arith.constant 0 : i32
    %c0_i32_1 = arith.constant 0 : i32
    return %c0_i32, %c0_i32_0 : i32, i32
  }
  func.func @transform_2(%arg0: i32) -> (i32, i32) {
    %c0_i32 = arith.constant 0 : i32
    %c0_i32_0 = arith.constant 0 : i32
    %c0_i32_1 = arith.constant 0 : i32
    return %c0_i32, %c0_i32_0 : i32, i32
  }
  func.func @transform_3(%arg0: i32) -> (i32, i32) {
    %c0_i32 = arith.constant 0 : i32
    %c0_i32_0 = arith.constant 0 : i32
    return %arg0, %c0_i32 : i32, i32
  }
  func.func @transform_4(%arg0: i32) -> (i32, i32) {
    %c0_i32 = arith.constant 0 : i32
    %c0_i32_0 = arith.constant 0 : i32
    %c0_i32_1 = arith.constant 0 : i32
    return %c0_i32, %c0_i32_0 : i32, i32
  }
  func.func @transform_5(%arg0: i32) -> (i32, i32) {
    %c0_i32 = arith.constant 0 : i32
    %c0_i32_0 = arith.constant 0 : i32
    %c0_i32_1 = arith.constant 0 : i32
    return %c0_i32, %c0_i32_0 : i32, i32
  }
  func.func @transform_6(%arg0: i32) -> (i32, i32) {
    %c0_i32 = arith.constant 0 : i32
    %c0_i32_0 = arith.constant 0 : i32
    return %arg0, %c0_i32 : i32, i32
  }
}

module attributes {stable_mosaic.version = 11 : i64} {
  func.func @_cls_ce_kernel(%arg0: i32, %arg1: i32, %arg2: memref<16x32xbf16, #tpu.memory_space<vmem>>, %arg3: memref<32x128xbf16, #tpu.memory_space<vmem>>, %arg4: memref<1x128xf32, #tpu.memory_space<vmem>>, %arg5: memref<16x1xi32, #tpu.memory_space<vmem>>, %arg6: memref<16x1xf32, #tpu.memory_space<vmem>>, %arg7: memref<16x1xf32, #tpu.memory_space<vmem>>, %arg8: memref<16x1xf32, #tpu.memory_space<vmem>>, %arg9: memref<16x1xf32, #tpu.memory_space<vmem>>) attributes {dimension_semantics = [#tpu.dimension_semantics<parallel>, #tpu.dimension_semantics<arbitrary>], iteration_bounds = array<i64: 1, 1>, scalar_prefetch = 0 : i64, scratch_operands = 3 : i64, tpu.core_type = #tpu.core_type<tc>, window_params = [{transform_indices = @transform_0, window_bounds = array<i64: 16, 32>}, {transform_indices = @transform_1, window_bounds = array<i64: 32, 128>}, {transform_indices = @transform_2, window_bounds = array<i64: 1, 128>}, {transform_indices = @transform_3, window_bounds = array<i64: 16, 1>}, {transform_indices = @transform_4, window_bounds = array<i64: 16, 1>}]} {
    %c0_i32 = arith.constant 0 : i32
    %0 = arith.cmpi eq, %arg1, %c0_i32 : i32
    %1 = arith.extui %0 : i1 to i32
    %c0_i32_0 = arith.constant 0 : i32
    %2 = arith.cmpi ne, %1, %c0_i32_0 : i32
    scf.if %2 {
      %cst_25 = arith.constant 0xFF800000 : f32
      %43 = vector.broadcast %cst_25 : f32 to vector<16x1xf32>
      %c0_26 = arith.constant 0 : index
      %c0_27 = arith.constant 0 : index
      %44 = vector.load %arg7[%c0_26, %c0_27] : memref<16x1xf32, #tpu.memory_space<vmem>>, vector<16x1xf32>
      tpu.vector_store %arg7[%c0_26, %c0_27], %43 {strides = array<i32>} : memref<16x1xf32, #tpu.memory_space<vmem>>, vector<16x1xf32>,
      %cst_28 = arith.constant 0.000000e+00 : f32
      %45 = vector.broadcast %cst_28 : f32 to vector<16x1xf32>
      %c0_29 = arith.constant 0 : index
      %c0_30 = arith.constant 0 : index
      %46 = vector.load %arg8[%c0_29, %c0_30] : memref<16x1xf32, #tpu.memory_space<vmem>>, vector<16x1xf32>
      tpu.vector_store %arg8[%c0_29, %c0_30], %45 {strides = array<i32>} : memref<16x1xf32, #tpu.memory_space<vmem>>, vector<16x1xf32>,
      %cst_31 = arith.constant 0.000000e+00 : f32
      %47 = vector.broadcast %cst_31 : f32 to vector<16x1xf32>
      %c0_32 = arith.constant 0 : index
      %c0_33 = arith.constant 0 : index
      %48 = vector.load %arg9[%c0_32, %c0_33] : memref<16x1xf32, #tpu.memory_space<vmem>>, vector<16x1xf32>
      tpu.vector_store %arg9[%c0_32, %c0_33], %47 {strides = array<i32>} : memref<16x1xf32, #tpu.memory_space<vmem>>, vector<16x1xf32>,
    } else {
    }
    %c0 = arith.constant 0 : index
    %c0_1 = arith.constant 0 : index
    %3 = vector.load %arg2[%c0, %c0_1] : memref<16x32xbf16, #tpu.memory_space<vmem>>, vector<16x32xbf16>
    %c0_2 = arith.constant 0 : index
    %c0_3 = arith.constant 0 : index
    %4 = vector.load %arg3[%c0_2, %c0_3] : memref<32x128xbf16, #tpu.memory_space<vmem>>, vector<32x128xbf16>
    %cst = arith.constant dense<0.000000e+00> : vector<16x128xf32>
    %5 = tpu.matmul %3, %4, %cst {dimension_numbers = #tpu.dot_dimension_numbers<[1], [0], [0], [1], [0, 0, 1, 1], [], []>} : vector<16x32xbf16>, vector<32x128xbf16>, vector<16x128xf32> -> vector<16x128xf32>
    %c0_4 = arith.constant 0 : index
    %c0_5 = arith.constant 0 : index
    %6 = vector.load %arg4[%c0_4, %c0_5] : memref<1x128xf32, #tpu.memory_space<vmem>>, vector<1x128xf32>
    %7 = vector.broadcast %6 : vector<1x128xf32> to vector<16x128xf32>
    %8 = arith.addf %5, %7 : vector<16x128xf32>
    %c128_i32 = arith.constant 128 : i32
    %9 = arith.muli %arg1, %c128_i32 : i32
    %10 = tpu.iota {dimensions = array<i32: 1>} : vector<16x128xi32>
    %11 = vector.broadcast %9 : i32 to vector<16x128xi32>
    %12 = arith.addi %11, %10 : vector<16x128xi32>
    %c0_6 = arith.constant 0 : index
    %c0_7 = arith.constant 0 : index
    %13 = vector.load %arg5[%c0_6, %c0_7] : memref<16x1xi32, #tpu.memory_space<vmem>>, vector<16x1xi32>
    %14 = vector.broadcast %13 : vector<16x1xi32> to vector<16x128xi32>
    %15 = arith.cmpi eq, %12, %14 : vector<16x128xi32>
    %16 = arith.extui %15 : vector<16x128xi1> to vector<16x128xi32>
    %17 = arith.sitofp %16 : vector<16x128xi32> to vector<16x128xf32>
    %c0_8 = arith.constant 0 : index
    %c0_9 = arith.constant 0 : index
    %18 = vector.load %arg9[%c0_8, %c0_9] : memref<16x1xf32, #tpu.memory_space<vmem>>, vector<16x1xf32>
    %19 = arith.mulf %8, %17 : vector<16x128xf32>
    %cst_10 = arith.constant dense<0.000000e+00> : vector<16xf32>
    %20 = vector.multi_reduction <add>, %19, %cst_10 [1] : vector<16x128xf32> to vector<16xf32>
    %21 = vector.shape_cast %20 : vector<16xf32> to vector<16x1xf32>
    %22 = arith.addf %18, %21 : vector<16x1xf32>
    %c0_11 = arith.constant 0 : index
    %c0_12 = arith.constant 0 : index
    %23 = vector.load %arg9[%c0_11, %c0_12] : memref<16x1xf32, #tpu.memory_space<vmem>>, vector<16x1xf32>
    tpu.vector_store %arg9[%c0_11, %c0_12], %22 {strides = array<i32>} : memref<16x1xf32, #tpu.memory_space<vmem>>, vector<16x1xf32>,
    %c0_13 = arith.constant 0 : index
    %c0_14 = arith.constant 0 : index
    %24 = vector.load %arg7[%c0_13, %c0_14] : memref<16x1xf32, #tpu.memory_space<vmem>>, vector<16x1xf32>
    %cst_15 = arith.constant dense<0xFF800000> : vector<16xf32>
    %25 = vector.multi_reduction <maximumf>, %8, %cst_15 [1] : vector<16x128xf32> to vector<16xf32>
    %26 = vector.shape_cast %25 : vector<16xf32> to vector<16x1xf32>
    %27 = arith.maximumf %24, %26 : vector<16x1xf32>
    %c0_16 = arith.constant 0 : index
    %c0_17 = arith.constant 0 : index
    %28 = vector.load %arg8[%c0_16, %c0_17] : memref<16x1xf32, #tpu.memory_space<vmem>>, vector<16x1xf32>
    %29 = arith.subf %24, %27 : vector<16x1xf32>
    %30 = math.exp %29 : vector<16x1xf32>
    %31 = arith.mulf %28, %30 : vector<16x1xf32>
    %32 = vector.broadcast %27 : vector<16x1xf32> to vector<16x128xf32>
    %33 = arith.subf %8, %32 : vector<16x128xf32>
    %34 = math.exp %33 : vector<16x128xf32>
    %cst_18 = arith.constant dense<0.000000e+00> : vector<16xf32>
    %35 = vector.multi_reduction <add>, %34, %cst_18 [1] : vector<16x128xf32> to vector<16xf32>
    %36 = vector.shape_cast %35 : vector<16xf32> to vector<16x1xf32>
    %37 = arith.addf %31, %36 : vector<16x1xf32>
    %c0_19 = arith.constant 0 : index
    %c0_20 = arith.constant 0 : index
    %38 = vector.load %arg8[%c0_19, %c0_20] : memref<16x1xf32, #tpu.memory_space<vmem>>, vector<16x1xf32>
    tpu.vector_store %arg8[%c0_19, %c0_20], %37 {strides = array<i32>} : memref<16x1xf32, #tpu.memory_space<vmem>>, vector<16x1xf32>,
    %c0_21 = arith.constant 0 : index
    %c0_22 = arith.constant 0 : index
    %39 = vector.load %arg7[%c0_21, %c0_22] : memref<16x1xf32, #tpu.memory_space<vmem>>, vector<16x1xf32>
    tpu.vector_store %arg7[%c0_21, %c0_22], %27 {strides = array<i32>} : memref<16x1xf32, #tpu.memory_space<vmem>>, vector<16x1xf32>,
    %c0_i32_23 = arith.constant 0 : i32
    %40 = arith.cmpi eq, %arg1, %c0_i32_23 : i32
    %41 = arith.extui %40 : i1 to i32
    %c0_i32_24 = arith.constant 0 : i32
    %42 = arith.cmpi ne, %41, %c0_i32_24 : i32
    scf.if %42 {
      %c0_25 = arith.constant 0 : index
      %c0_26 = arith.constant 0 : index
      %43 = vector.load %arg7[%c0_25, %c0_26] : memref<16x1xf32, #tpu.memory_space<vmem>>, vector<16x1xf32>
      %c0_27 = arith.constant 0 : index
      %c0_28 = arith.constant 0 : index
      %44 = vector.load %arg8[%c0_27, %c0_28] : memref<16x1xf32, #tpu.memory_space<vmem>>, vector<16x1xf32>
      %45 = math.log %44 : vector<16x1xf32>
      %46 = arith.addf %43, %45 : vector<16x1xf32>
      %c0_29 = arith.constant 0 : index
      %c0_30 = arith.constant 0 : index
      %47 = vector.load %arg9[%c0_29, %c0_30] : memref<16x1xf32, #tpu.memory_space<vmem>>, vector<16x1xf32>
      %48 = arith.subf %46, %47 : vector<16x1xf32>
      %c0_31 = arith.constant 0 : index
      %c0_32 = arith.constant 0 : index
      %49 = vector.load %arg6[%c0_31, %c0_32] : memref<16x1xf32, #tpu.memory_space<vmem>>, vector<16x1xf32>
      tpu.vector_store %arg6[%c0_31, %c0_32], %48 {strides = array<i32>} : memref<16x1xf32, #tpu.memory_space<vmem>>, vector<16x1xf32>,
    } else {
    }
    return
  }
  func.func @transform_0(%arg0: i32, %arg1: i32) -> (i32, i32) {
    %c0_i32 = arith.constant 0 : i32
    %c0_i32_0 = arith.constant 0 : i32
    return %arg0, %c0_i32 : i32, i32
  }
  func.func @transform_1(%arg0: i32, %arg1: i32) -> (i32, i32) {
    %c0_i32 = arith.constant 0 : i32
    %c0_i32_0 = arith.constant 0 : i32
    return %c0_i32, %arg1 : i32, i32
  }
  func.func @transform_2(%arg0: i32, %arg1: i32) -> (i32, i32) {
    %c0_i32 = arith.constant 0 : i32
    %c0_i32_0 = arith.constant 0 : i32
    return %c0_i32, %arg1 : i32, i32
  }
  func.func @transform_3(%arg0: i32, %arg1: i32) -> (i32, i32) {
    %c0_i32 = arith.constant 0 : i32
    %c0_i32_0 = arith.constant 0 : i32
    return %arg0, %c0_i32 : i32, i32
  }
  func.func @transform_4(%arg0: i32, %arg1: i32) -> (i32, i32) {
    %c0_i32 = arith.constant 0 : i32
    %c0_i32_0 = arith.constant 0 : i32
    return %arg0, %c0_i32 : i32, i32
  }
}

</mosaic_0001>

<bundles_post_ra>
// kernel: tpu_custom_call.1
= control target key start
LH: loop header
LB: loop body
LE: loop exit
PB: predicated region body
PF: predicated region fallthrough
CT: control target
= control target key end

     0   :  { %6 = vsyncpa [#allocation3], 0  ;;  %s125_s0 = inlined_call_operand.hbm [shape: f32[8,128], index: 0, kind: input, shape index: {}]   ;;  %s126_s1 = inlined_call_operand.hbm [shape: f32[8,128], index: 1, kind: output, shape index: {}]  }
   0x1   :  { %7 = vsyncpa [#allocation4], 0  ;;  %s89_s6 = smov [#allocation2]   ;;  %s41_s10 = scalar_lea.hbm %s125_s0, 128 }
   0x2   :  { %s14_s7 = sshll.u32 %s89_s6, 4  ;;  %p42_p0 = scmp.ne.s32.totalorder %s125_s0, %s41_s10  ;;  %s15_s7 = int_to_ptr.vmem [resolvable:$true] %s14_s7 }
   0x3   :  { %p45_p1 = scmp.lt.u32.totalorder %s41_s10, %s125_s0 }
   0x5   :  { %p47_p2 = pnand %p45_p1, %p42_p0 }
   0x7   :  { %50 = shalt.err (!%p47_p2)
}
   0x8   :  { %s51_s15 = scalar_lea.vmem %s15_s7, 128  ;;  %p56_p4 = scmp.lt.s32.totalorder %s15_s7, %s15_s7 }
   0x9   :  { %p52_p3 = scmp.ne.s32.totalorder %s15_s7, %s51_s15  ;;  %p57_p5 = scmp.lt.s32.totalorder %s51_s15, %s51_s15 }
   0xb   :  { %p58_p6 = por %p57_p5, %p56_p4 }
   0xd   :  { %p59_p7 = pnand %p58_p6, %p52_p3 }
   0xf   :  { %62 = shalt.err (!%p59_p7)
}
  0x10   :  { %17 = dma.hbm_to_vmem [thread:$0]  %s125_s0, 128, %s15_s7, [#allocation3]  }
  0x11   :  { %85 = dma.done.wait [#allocation3], 128  }
  0x12   :  { %86 = vsyncadd [#allocation3], 4294967168  ;;  %s90_s18 = smov [#allocation5]   ;;  %v21_v0 = vld [vmem:[#allocation2] sm:$0xff] }
  0x13   :  { %s30_s19 = sshll.u32 %s90_s18, 4  ;;  %v22_v1 = vadd.f32 1.0, %v21_v0  ;;  %s31_s19 = int_to_ptr.vmem [resolvable:$true] %s30_s19 }
  0x14   :  { %s63_s20 = scalar_lea.vmem %s31_s19, 128  ;;  %p68_p9 = scmp.lt.s32.totalorder %s31_s19, %s31_s19 }
  0x15   :  { %23 = vst [vmem:[#allocation5] sm:$0xff] %v22_v1  ;;  %p64_p8 = scmp.ne.s32.totalorder %s31_s19, %s63_s20  ;;  %p69_p10 = scmp.lt.s32.totalorder %s63_s20, %s63_s20 }
  0x17   :  { %p70_p11 = por %p69_p10, %p68_p9 }
  0x19   :  { %p71_p12 = pnand %p70_p11, %p64_p8 }
  0x1b   :  { %74 = shalt.err (!%p71_p12)
}
  0x1c   :  { %s75_s23 = scalar_lea.hbm %s126_s1, 128 }
  0x1d   :  { %p76_p13 = scmp.ne.s32.totalorder %s126_s1, %s75_s23  ;;  %p79_p0 = scmp.lt.u32.totalorder %s75_s23, %s126_s1 }
  0x1f   :  { %p81_p1 = pnand %p79_p0, %p76_p13 }
  0x21   :  { %84 = shalt.err (!%p81_p1)
}
  0x22   :  { %33 = dma.vmem_to_hbm [thread:$0]  %s31_s19, 128, %s126_s1, [#allocation4]  }
  0x23   :  { %87 = dma.done.wait [#allocation4], 128  }
  0x24   :  { %88 = vsyncadd [#allocation4], 4294967168 }
  0x25   :  { %37 = vsyncpa [#allocation3], 1 }
  0x26   :  { %38 = vsyncpa [#allocation4], 1 }

// kernel: sft_forward.8
= control target key start
LH: loop header
LB: loop body
LE: loop exit
PB: predicated region body
PF: predicated region fallthrough
CT: control target
= control target key end

     0   :  { %vm18_vm0 = vcmask 261120   ;;  %vm72_vm1 = vcmask 257024   ;;  %s132_s0 = inlined_call_operand.vmem [shape: bf16[16,32], index: 0, kind: input, shape index: {}]   ;;  %s133_s1 = inlined_call_operand.vmem [shape: f32[1,32], index: 1, kind: input, shape index: {}]   ;;  %s134_s2 = inlined_call_operand.vmem [shape: f32[1,32], index: 2, kind: input, shape index: {}]   ;;  %s135_s3 = inlined_call_operand.vmem [shape: bf16[16,32], index: 3, kind: output, shape index: {}]  }
   0x1   :  { %v86_v0 = vld [vmem:[%s132_s0] sm:$0xff]  }
   0x2   :  { %v87_v1 = vunpack.c.l.bf16 %v86_v0  ;;  %v88_v2 = vunpack.c.h.bf16 %v86_v0  ;;  %v79_v22 = vld [vmem:[%s133_s1] ss:$0 sm:$0xff] }
   0x3   :  { %v80_v24 = vld [vmem:[%s134_s2] ss:$0 sm:$0xff] }
   0x4   :  { %v19_v3 = vsel %vm18_vm0, %v87_v1, 0.0  ;;  %v22_v4 = vsel %vm18_vm0, %v88_v2, 0.0 }
   0x5   :  { %20 = vadd.xlane.f32.xlu0 %v19_v3 }
   0x9   :  { %23 = vadd.xlane.f32.xlu0 %v22_v4 }
  0x92   :  { %v21_v5 = vpop.xlane.xlu0 %20 }
  0x93   :  { %v26_v6 = vmul.f32 0.03125, %v21_v5 }
  0x95   :  { %v28_v7 = vsub.f32 %v87_v1, %v26_v6 }
  0x96   :  { %v24_v8 = vpop.xlane.xlu0 %23 }
  0x97   :  { %v27_v9 = vmul.f32 0.03125, %v24_v8  ;;  %v30_v10 = vmul.f32 %v28_v7, %v28_v7 }
  0x99   :  { %v29_v11 = vsub.f32 %v88_v2, %v27_v9  ;;  %v32_v12 = vsel %vm18_vm0, %v30_v10, 0.0 }
  0x9a   :  { %33 = vadd.xlane.f32.xlu1 %v32_v12 }
  0x9b   :  { %v31_v13 = vmul.f32 %v29_v11, %v29_v11 }
  0x9d   :  { %v35_v14 = vsel %vm18_vm0, %v31_v13, 0.0 }
  0x9e   :  { %36 = vadd.xlane.f32.xlu1 %v35_v14 }
 0x127   :  { %v34_v15 = vpop.xlane.xlu1 %33 }
 0x128   :  { %v38_v16 = vmul.f32 0.03125, %v34_v15 }
 0x12a   :  { %v40_v17 = vadd.f32 1e-12, %v38_v16 }
 0x12b   :  { %v37_v18 = vpop.xlane.xlu1 %36 }
 0x12c   :  { %89 = vrsqrt.f32 %v40_v17  ;;  %v39_v19 = vmul.f32 0.03125, %v37_v18 }
 0x12e   :  { %v41_v20 = vadd.f32 1e-12, %v39_v19 }
 0x130   :  { %91 = vrsqrt.f32 %v41_v20 }
 0x136   :  { %v90_v21 = vpop.eup %89 }
 0x137   :  { %v44_v23 = vmul.f32 %v90_v21, %v28_v7 }
 0x139   :  { %v53_v25 = vmul.f32 %v79_v22, %v44_v23 }
 0x13a   :  { %v92_v26 = vpop.eup %91 }
 0x13b   :  { %v62_v27 = vadd.f32 %v80_v24, %v53_v25  ;;  %v45_v28 = vmul.f32 %v92_v26, %v29_v11 }
 0x13d   :  { %v83_v29 = vpack.c.bf16 %v62_v27, %v62_v27  ;;  %v54_v30 = vmul.f32 %v79_v22, %v45_v28 }
 0x13f   :  { %73 = vst.msk [vmem:[%s135_s3] sm:$0xf] %vm72_vm1, %v83_v29  ;;  %v63_v31 = vadd.f32 %v80_v24, %v54_v30 }
 0x141   :  { %v84_v32 = vpack.c.bf16 %v63_v31, %v63_v31 }
 0x143   :  { %74 = vst.msk [vmem:[%s135_s3 + $0x4] sm:$0xf] %vm72_vm1, %v84_v32 }

// kernel: sft_forward.10
= control target key start
LH: loop header
LB: loop body
LE: loop exit
PB: predicated region body
PF: predicated region fallthrough
CT: control target
= control target key end

     0   :  { %v200_v0 = vmov 0.0   ;;  %vm201_vm0 = vmmov 0   ;;  %vm54_vm1 = vcmask 261120   ;;  %vm158_vm2 = vcmask 257024   ;;  %s269_s1 = inlined_call_operand.vmem [shape: bf16[32,32], index: 1, kind: input, shape index: {}]   ;;  %s270_s0 = inlined_call_operand.vmem [shape: bf16[16,32], index: 0, kind: input, shape index: {}]   ;;  %s271_s3 = inlined_call_operand.vmem [shape: bf16[16,32], index: 3, kind: input, shape index: {}]   ;;  %s272_s2 = inlined_call_operand.vmem [shape: f32[1,32], index: 2, kind: input, shape index: {}]   ;;  %s273_s4 = inlined_call_operand.vmem [shape: f32[1,32], index: 4, kind: input, shape index: {}]   ;;  %s274_s5 = inlined_call_operand.vmem [shape: f32[1,32], index: 5, kind: input, shape index: {}]   ;;  %s275_s6 = inlined_call_operand.vmem [shape: bf16[16,32], index: 6, kind: output, shape index: {}]  }
   0x1   :  { %183 = vmatprep.subr.bf16.mxu0 %v200_v0  ;;  %v193_v1 = vld [vmem:[%s269_s1] sm:$0xff]   ;;  %187 = vmatprep.mubr.msk.bf16.mxu0 %vm201_vm0, %v200_v0  ;;  %v194_v2 = vld [vmem:[%s269_s1 + $0x8] sm:$0xff]  }
   0x2   :  { %184 = vmatpush3.bf16.msra.mxu0 %v193_v1  ;;  %v195_v3 = vld [vmem:[%s270_s0] sm:$0xff]  }
   0x3   :  { %185 = vmatprep.subr.bf16.mxu0 %v200_v0  ;;  %v177_v4 = vld [vmem:[%s271_s3] sm:$0xff]  }
   0x4   :  { %v165_v5 = vld [vmem:[%s272_s2] ss:$0 sm:$0xff]  ;;  %v178_v6 = vunpack.c.l.bf16 %v177_v4  ;;  %v179_v10 = vunpack.c.h.bf16 %v177_v4 }
   0x5   :  { %v170_v35 = vld [vmem:[%s273_s4] ss:$0 sm:$0xff] }
   0x6   :  { %186 = vmatpush3.bf16.msra.mxu0 %v194_v2  ;;  %v171_v37 = vld [vmem:[%s274_s5] ss:$0 sm:$0xff] }
   0x9   :  { %188 = vmatmul.mubr.msk.bf16.vlgmr.msra.gmra.mrb[0].mxu0 %vm54_vm1, %v195_v3 }
  0xdc   :  { %v92_v7 = vpop.f32.mrb[0].mxu0 }
  0xdd   :  { %v93_v8 = vadd.f32 %v165_v5, %v92_v7  ;;  %v189_v9 = vpop.f32.mrb[1].mxu0 }
  0xde   :  { %v95_v11 = vpop.f32.mrb[2].mxu0 }
  0xdf   :  { %v96_v12 = vadd.f32 %v165_v5, %v95_v11  ;;  %v190_v13 = vpop.f32.mrb[3].mxu0  ;;  %v103_v14 = vadd.f32 %v178_v6, %v93_v8 }
  0xe1   :  { %v105_v15 = vsel %vm54_vm1, %v103_v14, 0.0  ;;  %v104_v16 = vadd.f32 %v179_v10, %v96_v12 }
  0xe2   :  { %106 = vadd.xlane.f32.xlu0 %v105_v15 }
  0xe3   :  { %v108_v17 = vsel %vm54_vm1, %v104_v16, 0.0 }
  0xe6   :  { %109 = vadd.xlane.f32.xlu0 %v108_v17 }
 0x16f   :  { %v107_v18 = vpop.xlane.xlu0 %106 }
 0x170   :  { %v112_v19 = vmul.f32 0.03125, %v107_v18 }
 0x172   :  { %v114_v20 = vsub.f32 %v103_v14, %v112_v19 }
 0x173   :  { %v110_v21 = vpop.xlane.xlu0 %109 }
 0x174   :  { %v113_v22 = vmul.f32 0.03125, %v110_v21  ;;  %v116_v23 = vmul.f32 %v114_v20, %v114_v20 }
 0x176   :  { %v115_v24 = vsub.f32 %v104_v16, %v113_v22  ;;  %v118_v25 = vsel %vm54_vm1, %v116_v23, 0.0 }
 0x177   :  { %119 = vadd.xlane.f32.xlu1 %v118_v25 }
 0x178   :  { %v117_v26 = vmul.f32 %v115_v24, %v115_v24 }
 0x17a   :  { %v121_v27 = vsel %vm54_vm1, %v117_v26, 0.0 }
 0x17b   :  { %122 = vadd.xlane.f32.xlu1 %v121_v27 }
 0x204   :  { %v120_v28 = vpop.xlane.xlu1 %119 }
 0x205   :  { %v124_v29 = vmul.f32 0.03125, %v120_v28 }
 0x207   :  { %v126_v30 = vadd.f32 1e-12, %v124_v29 }
 0x208   :  { %v123_v31 = vpop.xlane.xlu1 %122 }
 0x209   :  { %196 = vrsqrt.f32 %v126_v30  ;;  %v125_v32 = vmul.f32 0.03125, %v123_v31 }
 0x20b   :  { %v127_v33 = vadd.f32 1e-12, %v125_v32 }
 0x20d   :  { %198 = vrsqrt.f32 %v127_v33 }
 0x213   :  { %v197_v34 = vpop.eup %196 }
 0x214   :  { %v130_v36 = vmul.f32 %v197_v34, %v114_v20 }
 0x216   :  { %v139_v38 = vmul.f32 %v170_v35, %v130_v36 }
 0x217   :  { %v199_v39 = vpop.eup %198 }
 0x218   :  { %v148_v40 = vadd.f32 %v171_v37, %v139_v38  ;;  %v131_v41 = vmul.f32 %v199_v39, %v115_v24 }
 0x21a   :  { %v174_v42 = vpack.c.bf16 %v148_v40, %v148_v40  ;;  %v140_v43 = vmul.f32 %v170_v35, %v131_v41 }
 0x21c   :  { %159 = vst.msk [vmem:[%s275_s6] sm:$0xf] %vm158_vm2, %v174_v42  ;;  %v149_v44 = vadd.f32 %v171_v37, %v140_v43 }
 0x21e   :  { %v175_v45 = vpack.c.bf16 %v149_v44, %v149_v44 }
 0x220   :  { %160 = vst.msk [vmem:[%s275_s6 + $0x4] sm:$0xf] %vm158_vm2, %v175_v45 }

// kernel: sft_forward.9
= control target key start
LH: loop header
LB: loop body
LE: loop exit
PB: predicated region body
PF: predicated region fallthrough
CT: control target
= control target key end

     0   :  { %s944_s0 = inlined_call_operand.vmem [shape: s32[2], index: 0, kind: input, shape index: {}]   ;;  %s945_s2 = inlined_call_operand.vmem [shape: bf16[2,8,32], index: 2, kind: input, shape index: {}]   ;;  %s946_s3 = inlined_call_operand.vmem [shape: bf16[1,32,96], index: 3, kind: input, shape index: {}]   ;;  %s947_s4 = inlined_call_operand.vmem [shape: f32[1,1,96], index: 4, kind: input, shape index: {}]   ;;  %s948_s5 = inlined_call_operand.vmem [shape: bf16[2,8,32], index: 5, kind: output, shape index: {}]   ;;  %s949_s1 = inlined_call_operand.vmem [shape: s32[2], index: 1, kind: input, shape index: {}]  }
   0x1   :  { %s10_s20 = sshll.u32 %s944_s0, 4  ;;  %s14_s23 = sshll.u32 %s949_s1, 4  ;;  %s11_s20 = int_to_ptr.vmem [resolvable:$true] %s10_s20  ;;  %s15_s23 = int_to_ptr.vmem [resolvable:$true] %s14_s23 }
   0x2   :  { %s758_s24 = scalar_lea.vmem %s11_s20, 16  ;;  %p763_p1 = scmp.lt.s32.totalorder %s11_s20, %s11_s20 }
   0x3   :  { %p759_p0 = scmp.ne.s32.totalorder %s11_s20, %s758_s24  ;;  %p764_p2 = scmp.lt.s32.totalorder %s758_s24, %s758_s24 }
   0x5   :  { %p765_p3 = por %p764_p2, %p763_p1 }
   0x7   :  { %p766_p4 = pnand %p765_p3, %p759_p0 }
   0x9   :  { %769 = shalt.err (!%p766_p4)  }
   0xa   :  { %s808_s25 = smov [#allocation3]   ;;  %s770_s26 = scalar_lea.vmem %s15_s23, 16 }
   0xb   :  { %13 = dma.vmem_to_smem %s11_s20, 16, %s808_s25, [#allocation2] }
   0xc   :  { %p771_p5 = scmp.ne.s32.totalorder %s15_s23, %s770_s26  ;;  %p775_p6 = scmp.lt.s32.totalorder %s15_s23, %s15_s23 }
   0xd   :  { %p776_p7 = scmp.lt.s32.totalorder %s770_s26, %s770_s26 }
   0xf   :  { %p777_p8 = por %p776_p7, %p775_p6 }
  0x11   :  { %p778_p9 = pnand %p777_p8, %p771_p5 }
  0x13   :  { %781 = shalt.err (!%p778_p9)  }
  0x14   :  { %s809_s0 = smov [#allocation4]  }
  0x15   :  { %17 = dma.vmem_to_smem %s15_s23, 16, %s809_s0, [#allocation2] }
  0x16   :  { %794 = dma.done.wait [#allocation2], 32 }
  0x17   :  { %795 = vsyncadd [#allocation2], 4294967264 }
  0x18   :  { %19 = sfence }
  0x19   :  { %s854_s1 = smov 0   ;;  %s856_s27 = smov 0  }
  0x1a   :  { %s858_s28 = smov 0  }
  0x1b LB: > { %s37_s29 = sadd.s32 1, %s802_s27  ;;  %p658_p10 = scmp.ge.s32.totalorder %s806_s28, 1  ;;  %s806_s28 = sphi %s858_s28, %s25_s28   ;;  %s802_s27 = sphi %s856_s27, %s951_s27   ;;  %s798_s1 = sphi %s854_s1, %s950_s1  }
  0x1c   : > { %p39_p11 = scmp.ge.s32.totalorder %s37_s29, 2  ;;  %p180_p12 = scmp.lt.s32.totalorder %s806_s28, 3 }
  0x1e   : > { %s953_s29 = smov (%p39_p11, %s37_s29), 0  ;;  %p181_p13 = pnand %p658_p10, %p180_p12 }
  0x1f   : > { %v748_v0 = vld [vmem:[%s946_s3] sm:$0xff] (!%p181_p13)   ;;  %v810_v1 = vmov (!%p181_p13), 0.0   ;;  %v749_v2 = vld [vmem:[%s946_s3 + $0x8] sm:$0xff] (!%p181_p13)   ;;  %vm811_vm0 = vmmov (!%p181_p13), 0   ;;  %p213_p0 = scmp.lt.s32.totalorder (!%p181_p13), %s798_s1, 1  ;;  %vm260_vm1 = vcmask (!%p181_p13), 261120   ;;  %v305_v16 = vlaneseq (!%p181_p13) }
  0x20   : > { %184 = sbr.rel (%p181_p13) target bundleno = 1253 (0x4e5), region = 32  ;;  %682 = vmatprep.subr.bf16.mxu0 (!%p181_p13), %v810_v1  ;;  %690 = vmatprep.subr.bf16.mxu1 (!%p181_p13), %v810_v1  ;;  %v661_v4 = vld [vmem:[%s947_s4] ss:$0 sm:$0xff] (!%p181_p13)  ;;  %s812_s16 = smov (!%p181_p13), 112   ;;  %vm322_vm2 = vcmask (!%p181_p13), 130048   ;;  %vm371_vm10 = vcmask (!%p181_p13), 64512  }
  0x21   : > { %683 = vmatpush3.bf16.msra.mxu0 (!%p181_p13), %v748_v0  ;;  %686 = vmatprep.mubr.msk.bf16.mxu0 (!%p181_p13), %vm811_vm0, %v810_v1  ;;  %s813_s17 = smov (!%p181_p13), 96   ;;  %s814_s18 = smov (!%p181_p13), 80   ;;  %v306_v17 = vshrl.u32 (!%p181_p13), %v305_v16, 7  ;;  %v308_v18 = vand.u32 (!%p181_p13), 127, %v305_v16  ;;  %vm389_vm11 = vcmask (!%p181_p13), 1043456   ;;  %vm551_vm12 = vcmask (!%p181_p13), 257024  }
  0x22   : > { %684 = vmatprep.subr.bf16.mxu0 (!%p181_p13), %v810_v1  ;;  %692 = vmatprep.mubr.msk.bf16.mxu1 (!%p181_p13), %vm811_vm0, %v810_v1  ;;  %s234_s19 = sld [smem:[#allocation4 + %s798_s1]] (!%p181_p13)  ;;  %s815_s22 = smov (!%p181_p13), 64  }
  0x23   : > { %s233_s20 = sld [smem:[#allocation3 + %s798_s1]] (!%p181_p13)  ;;  %vm312_vm4 = vcmp.le.s32.totalorder (!%p181_p13), %v308_v18, %v306_v17  ;;  %s816_s23 = smov (!%p181_p13), 48  }
  0x24   : > { %s817_s24 = smov (!%p181_p13), 16  }
  0x25   : > { %685 = vmatpush3.bf16.msra.mxu0 (!%p181_p13), %v749_v2 }
  0x26   : > { %696 = vmatprep.subr.bf16.mxu0 (!%p181_p13), %v810_v1 }
  0x27   : > { %s889_s9 = scalar_select %p213_p0, %s798_s1, 1 }
  0x28   : > { %p235_p1 = scmp.eq.s32.totalorder %s234_s19, 0 }
  0x29   : > { %s659_s10 = sshll.u32 %s889_s9, 2  ;;  %v309_v19 = vstv %s233_s20 }
  0x2a   : > { %s216_s13 = scalar_lea.vmem %s945_s2, %s659_s10  ;;  %vm311_vm3 = vcmp.gt.s32.totalorder %v306_v17, %v309_v19  ;;  %vm310_vm5 = vcmp.le.s32.totalorder %v308_v18, %v309_v19  ;;  %s231_s0 = scalar_lea.vmem %s948_s5, %s659_s10 }
  0x2b   : > { %v236_v3 = vld [vmem:[%s216_s13] sm:$0xf]  ;;  %s315_s21 = scalar_select %p235_p1, 1, 0  ;;  %vm313_vm6 = vmand %vm311_vm3, %vm312_vm4 }
  0x2c   : > { %687 = vmatmul.mubr.msk.bf16.vlgmr.msra.gmra.mrb[0].mxu0 %vm260_vm1, %v236_v3  ;;  %vm314_vm7 = vmor %vm310_vm5, %vm313_vm6 }
  0x2d   : > { %698 = vmatprep.mubr.msk.bf16.mxu0 %vm811_vm0, %v810_v1  ;;  %v316_v20 = vstv %s315_s21 }
  0x2e   : > { %vm317_vm8 = vcmp.eq.s32.totalorder %v316_v20, 1 }
  0x2f   : > { %vm318_vm9 = vmor %vm314_vm7, %vm317_vm8 }
  0xff   : > { %v298_v5 = vpop.f32.mrb[0].mxu0 }
 0x100   : > { %v299_v6 = vadd.f32 %v661_v4, %v298_v5  ;;  %v688_v7 = vpop.f32.mrb[1].mxu0 }
 0x101   : > { %v301_v8 = vpop.f32.mrb[2].mxu0 }
 0x102   : > { %v903_v9 = vpack.c.bf16 %v299_v6, %v299_v6  ;;  %v689_v10 = vpop.f32.mrb[3].mxu0 }
 0x104   : > { %433 = vrot.lane.b32.xlu1 %v903_v9, %s812_s16  ;;  %320 = vrot.lane.b32.xlu0 %v903_v9, %s813_s17 }
 0x108   : > { %435 = vrot.lane.b32.xlu0 %v903_v9, %s814_s18 }
 0x176   : > { %v321_v11 = vpop.permute.xlu0 %320  ;;  %v434_v15 = vpop.permute.xlu1 %433 }
 0x177   : > { %v327_v12 = vsel %vm322_vm2, %v321_v11, 0 }
 0x178   : > { %691 = vmatpush3.bf16.xpose.msra.mxu1 %v327_v12 }
 0x179   : > { %702 = vmatprep.subr.bf16.mxu1 %v810_v1 }
 0x17a   : > { %v436_v13 = vpop.permute.xlu0 %435 }
 0x17b   : > { %v441_v14 = vsel %vm322_vm2, %v436_v13, 0 }
 0x17f   : > { %693 = vmatmul.mubr.msk.bf16.vlgmr.msra.gmra.mrb[0].mxu1 %vm322_vm2, %v903_v9 }
 0x180   : > { %703 = vmatpush3.bf16.xpose.msra.mxu1 %v441_v14  ;;  %704 = vmatprep.mubr.msk.bf16.mxu1 %vm811_vm0, %v810_v1 }
 0x187   : > { %705 = vmatmul.mubr.msk.bf16.vlgmr.msra.gmra.mrb[4].mxu1 %vm322_vm2, %v434_v15 }
 0x252   : > { %v363_v21 = vpop.f32.mrb[0].mxu1 }
 0x253   : > { %v369_v22 = vmul.f32 0.25, %v363_v21  ;;  %v694_v23 = vpop.f32.mrb[1].mxu1 }
 0x254   : > { %v366_v24 = vpop.f32.mrb[2].mxu1 }
 0x255   : > { %v695_v25 = vpop.f32.mrb[3].mxu1  ;;  %v370_v26 = vsel %vm318_vm9, %v369_v22, -1e+09 }
 0x256   : > { %v372_v27 = vsel %vm371_vm10, %v370_v26, -inf }
 0x257   : > { %373 = vmax.xlane.f32.xlu1 %v372_v27 }
 0x25a   : > { %v477_v28 = vpop.f32.mrb[4].mxu1 }
 0x25b   : > { %v483_v29 = vmul.f32 0.25, %v477_v28  ;;  %v706_v30 = vpop.f32.mrb[5].mxu1 }
 0x25c   : > { %v480_v31 = vpop.f32.mrb[6].mxu1 }
 0x25d   : > { %v707_v32 = vpop.f32.mrb[7].mxu1  ;;  %v484_v33 = vsel %vm318_vm9, %v483_v29, -1e+09 }
 0x25e   : > { %v485_v34 = vsel %vm371_vm10, %v484_v33, -inf }
 0x25f   : > { %486 = vmax.xlane.f32.xlu0 %v485_v34 }
 0x2e4   : > { %v374_v35 = vpop.xlane.xlu1 %373 }
 0x2e5   : > { %v375_v36 = vsub.f32 %v370_v26, %v374_v35 }
 0x2e7   : > { %v376_v37 = vmul.f32 1.442695, %v375_v36 }
 0x2e9   : > { %750 = vpow2.f32 %v376_v37 }
 0x2ec   : > { %v487_v38 = vpop.xlane.xlu0 %486 }
 0x2ed   : > { %v488_v39 = vsub.f32 %v484_v33, %v487_v38 }
 0x2ef   : > { %v489_v40 = vmul.f32 1.442695, %v488_v39 }
 0x2f1   : > { %752 = vpow2.f32 %v489_v40 }
 0x2f3   : > { %v751_v41 = vpop.eup %750 }
 0x2f4   : > { %v378_v42 = vsel %vm371_vm10, %v751_v41, 0.0 }
 0x2f5   : > { %379 = vadd.xlane.f32.xlu0 %v378_v42 }
 0x2fb   : > { %v753_v43 = vpop.eup %752 }
 0x2fc   : > { %v491_v44 = vsel %vm371_vm10, %v753_v43, 0.0 }
 0x2fd   : > { %492 = vadd.xlane.f32.xlu1 %v491_v44 }
 0x30b   : > { %384 = vrot.lane.b32.xlu0 %v903_v9, %s815_s22 }
 0x30e   : > { %497 = vrot.lane.b32.xlu1 %v903_v9, %s816_s23 }
 0x382   : > { %v380_v45 = vpop.xlane.xlu0 %379 }
 0x383   : > { %754 = vrcp.f32 %v380_v45 }
 0x386   : > { %v385_v46 = vpop.permute.xlu0 %384 }
 0x387   : > { %v391_v47 = vsel %vm389_vm11, %v385_v46, 0 }
 0x388   : > { %697 = vmatpush3.bf16.msra.mxu0 %v391_v47 }
 0x389   : > { %708 = vmatprep.subr.bf16.mxu0 %v810_v1 }
 0x38a   : > { %v493_v48 = vpop.xlane.xlu1 %492 }
 0x38b   : > { %756 = vrcp.f32 %v493_v48 }
 0x38d   : > { %v755_v49 = vpop.eup %754 }
 0x38e   : > { %v382_v50 = vmul.f32 %v755_v49, %v751_v41  ;;  %v498_v51 = vpop.permute.xlu1 %497 }
 0x38f   : > { %v503_v53 = vsel %vm389_vm11, %v498_v51, 0 }
 0x390   : > { %v383_v52 = vpack.c.bf16 %v382_v50, %v382_v50 }
 0x392   : > { %699 = vmatmul.mubr.msk.bf16.vlgmr.msra.gmra.mrb[4].mxu0 %vm371_vm10, %v383_v52 }
 0x393   : > { %709 = vmatpush3.bf16.msra.mxu0 %v503_v53  ;;  %710 = vmatprep.mubr.msk.bf16.mxu0 %vm811_vm0, %v810_v1 }
 0x395   : > { %v757_v54 = vpop.eup %756 }
 0x396   : > { %v495_v55 = vmul.f32 %v757_v54, %v753_v43 }
 0x398   : > { %v496_v56 = vpack.c.bf16 %v495_v55, %v495_v55 }
 0x39a   : > { %711 = vmatmul.mubr.msk.bf16.vlgmr.msra.gmra.mrb[8].mxu0 %vm371_vm10, %v496_v56 }
 0x465   : > { %v427_v57 = vpop.f32.mrb[4].mxu0 }
 0x466   : > { %v700_v58 = vpop.f32.mrb[5].mxu0 }
 0x467   : > { %v430_v59 = vpop.f32.mrb[6].mxu0 }
 0x468   : > { %v701_v60 = vpop.f32.mrb[7].mxu0 }
 0x46d   : > { %v539_v61 = vpop.f32.mrb[8].mxu0 }
 0x46e   : > { %546 = vrot.lane.b32.xlu1 %v539_v61, %s817_s24  ;;  %v712_v62 = vpop.f32.mrb[9].mxu0 }
 0x46f   : > { %v542_v63 = vpop.f32.mrb[10].mxu0 }
 0x470   : > { %v713_v0 = vpop.f32.mrb[11].mxu0 }
 0x4e0   : > { %v547_v2 = vpop.permute.xlu1 %546 }
 0x4e1   : > { %v549_v1 = vsel %vm322_vm2, %v427_v57, %v547_v2 }
 0x4e2   : > { %v550_v3 = vpack.c.bf16 %v549_v1, %v549_v1 }
 0x4e4   : > { %552 = vst.msk [vmem:[%s231_s0] sm:$0xf] %vm551_vm12, %v550_v3 }
 0x4e5 PF: > { %s25_s28 = sadd.s32 1, %s806_s28   ;;  %s950_s1 = smov %s802_s27 }
 0x4e6   : > { %p22_p2 = scmp.ge.s32.totalorder %s25_s28, 4   ;;  %s951_s27 = smov %s953_s29 }
 0x4e8   :  { %24 = sbr.rel (!%p22_p2) target bundleno = 27 (0x1b), region = 68 }

// kernel: sft_forward.11
= control target key start
LH: loop header
LB: loop body
LE: loop exit
PB: predicated region body
PF: predicated region fallthrough
CT: control target
= control target key end

     0   :  { %vm31_vm0 = vcmask 261120   ;;  %v399_v0 = vmov 0.0   ;;  %vm400_vm1 = vmmov 0   ;;  %vm310_vm2 = vcmask 257024   ;;  %s506_s1 = inlined_call_operand.vmem [shape: bf16[32,128], index: 1, kind: input, shape index: {}]   ;;  %s507_s0 = inlined_call_operand.vmem [shape: bf16[16,32], index: 0, kind: input, shape index: {}]   ;;  %s508_s3 = inlined_call_operand.vmem [shape: bf16[128,32], index: 3, kind: input, shape index: {}]   ;;  %s509_s2 = inlined_call_operand.vmem [shape: f32[1,128], index: 2, kind: input, shape index: {}]   ;;  %s510_s4 = inlined_call_operand.vmem [shape: f32[1,32], index: 4, kind: input, shape index: {}]   ;;  %s511_s5 = inlined_call_operand.vmem [shape: f32[1,32], index: 5, kind: input, shape index: {}]   ;;  %s512_s6 = inlined_call_operand.vmem [shape: f32[1,32], index: 6, kind: input, shape index: {}]   ;;  %s513_s7 = inlined_call_operand.vmem [shape: bf16[16,32], index: 7, kind: output, shape index: {}]  }
   0x1   :  { %349 = vmatprep.subr.bf16.mxu0 %v399_v0  ;;  %v379_v1 = vld [vmem:[%s506_s1] sm:$0xff]   ;;  %353 = vmatprep.mubr.msk.bf16.mxu0 %vm400_vm1, %v399_v0  ;;  %32 = vst.msk [vmem:[#allocation2] sm:$0xff] %vm31_vm0, %v399_v0  ;;  %33 = vst.msk [vmem:[#allocation2 + $0x8] sm:$0xff] %vm31_vm0, %v399_v0  ;;  %v380_v2 = vld [vmem:[%s506_s1 + $0x8] sm:$0xff]  }
   0x2   :  { %357 = vmatprep.subr.bf16.mxu1 %v399_v0  ;;  %373 = vmatprep.mubr.msk.bf16.mxu1 %vm400_vm1, %v399_v0  ;;  %v452_v3 = vld [vmem:[%s507_s0] sm:$0xff]   ;;  %v383_v5 = vld [vmem:[%s508_s3 + $0x8] sm:$0xff]   ;;  %v384_v6 = vld [vmem:[%s508_s3 + $0x10] sm:$0xff]  }
   0x3   :  { %350 = vmatpush3.bf16.msra.mxu0 %v379_v1  ;;  %v382_v4 = vld [vmem:[%s508_s3] sm:$0xff]   ;;  %v385_v7 = vld [vmem:[%s508_s3 + $0x18] sm:$0xff]   ;;  %v387_v9 = vld [vmem:[%s508_s3 + $0x28] sm:$0xff]   ;;  %v253_v47 = vunpack.c.l.bf16 %v452_v3  ;;  %v254_v50 = vunpack.c.h.bf16 %v452_v3 }
   0x4   :  { %351 = vmatprep.subr.bf16.mxu0 %v399_v0  ;;  %358 = vmatpush3.bf16.msra.mxu1 %v382_v4  ;;  %v386_v8 = vld [vmem:[%s508_s3 + $0x20] sm:$0xff]   ;;  %v388_v10 = vld [vmem:[%s508_s3 + $0x30] sm:$0xff]   ;;  %v389_v11 = vld [vmem:[%s508_s3 + $0x38] sm:$0xff]  }
   0x5   :  { %359 = vmatprep.subr.bf16.mxu1 %v399_v0  ;;  %v317_v12 = vld [vmem:[%s509_s2] ss:$0 sm:$0xff] }
   0x6   :  { %v330_v46 = vld [vmem:[%s510_s4] ss:$0 sm:$0xff] }
   0x7   :  { %352 = vmatpush3.bf16.msra.mxu0 %v380_v2 }
   0x8   :  { %360 = vmatpush3.bf16.msra.mxu1 %v383_v5  ;;  %v127_v38 = vld [vmem:[#allocation2] sm:$0xff]  ;;  %v128_v40 = vld [vmem:[#allocation2 + $0x8] sm:$0xff] }
   0x9   :  { %361 = vmatprep.subr.bf16.mxu1 %v399_v0 }
   0xa   :  { %354 = vmatmul.mubr.msk.bf16.vlgmr.msra.gmra.mrb[0].mxu0 %vm31_vm0, %v452_v3 }
   0xc   :  { %362 = vmatpush3.bf16.msra.mxu1 %v384_v6 }
   0xd   :  { %363 = vmatprep.subr.bf16.mxu1 %v399_v0 }
  0x10   :  { %364 = vmatpush3.bf16.msra.mxu1 %v385_v7 }
  0x11   :  { %365 = vmatprep.subr.bf16.mxu1 %v399_v0 }
  0x14   :  { %366 = vmatpush3.bf16.msra.mxu1 %v386_v8 }
  0x15   :  { %367 = vmatprep.subr.bf16.mxu1 %v399_v0 }
  0x18   :  { %368 = vmatpush3.bf16.msra.mxu1 %v387_v9 }
  0x19   :  { %369 = vmatprep.subr.bf16.mxu1 %v399_v0 }
  0x1c   :  { %370 = vmatpush3.bf16.msra.mxu1 %v388_v10  ;;  %v331_v10 = vld [vmem:[%s511_s5] ss:$0 sm:$0xff] }
  0x1d   :  { %371 = vmatprep.subr.bf16.mxu1 %v399_v0 }
  0x20   :  { %372 = vmatpush3.bf16.msra.mxu1 %v389_v11 }
  0xdd   :  { %v102_v13 = vpop.f32.mrb[0].mxu0 }
  0xde   :  { %v103_v14 = vadd.f32 %v317_v12, %v102_v13  ;;  %v355_v15 = vpop.f32.mrb[1].mxu0 }
  0xdf   :  { %v105_v16 = vpop.f32.mrb[2].mxu0 }
  0xe0   :  { %v109_v17 = vmul.f32 %v103_v14, %v103_v14  ;;  %v106_v18 = vadd.f32 %v317_v12, %v105_v16  ;;  %v356_v19 = vpop.f32.mrb[3].mxu0  ;;  %v332_v12 = vld [vmem:[%s512_s6] ss:$0 sm:$0xff] }
  0xe2   :  { %v111_v20 = vmul.f32 %v109_v17, %v103_v14  ;;  %v110_v21 = vmul.f32 %v106_v18, %v106_v18 }
  0xe4   :  { %v113_v22 = vmul.f32 0.044715, %v111_v20  ;;  %v112_v23 = vmul.f32 %v110_v21, %v106_v18 }
  0xe6   :  { %v115_v24 = vadd.f32 %v113_v22, %v103_v14  ;;  %v114_v25 = vmul.f32 0.044715, %v112_v23 }
  0xe8   :  { %v117_v26 = vmul.f32 0.7978846, %v115_v24  ;;  %v116_v27 = vadd.f32 %v114_v25, %v106_v18 }
  0xea   :  { %391 = vtanh.f32 %v117_v26  ;;  %v118_v28 = vmul.f32 0.7978846, %v116_v27 }
  0xec   :  { %393 = vtanh.f32 %v118_v28 }
  0xf4   :  { %v392_v29 = vpop.eup %391 }
  0xf5   :  { %v121_v30 = vadd.f32 1.0, %v392_v29 }
  0xf6   :  { %v394_v31 = vpop.eup %393 }
  0xf7   :  { %v122_v32 = vadd.f32 1.0, %v394_v31  ;;  %v123_v33 = vmul.f32 0.5, %v121_v30 }
  0xf9   :  { %v124_v34 = vmul.f32 0.5, %v122_v32  ;;  %v125_v35 = vmul.f32 %v123_v33, %v103_v14 }
  0xfb   :  { %v126_v36 = vmul.f32 %v124_v34, %v106_v18 }
  0xfd   :  { %v129_v37 = vpack.c.bf16 %v126_v36, %v125_v35 }
  0xff   :  { %374 = vmatmul.mubr.bf16.vlgmr.msra.gmra.mrb[0].mxu1 %v129_v37 }
 0x1d2   :  { %v228_v39 = vpop.f32.mrb[0].mxu1 }
 0x1d3   :  { %v235_v41 = vadd.f32 %v228_v39, %v127_v38  ;;  %v375_v42 = vpop.f32.mrb[1].mxu1 }
 0x1d4   :  { %v231_v43 = vpop.f32.mrb[2].mxu1 }
 0x1d5   :  { %237 = vst.msk [vmem:[#allocation2] sm:$0xff] %vm31_vm0, %v235_v41  ;;  %v236_v44 = vadd.f32 %v231_v43, %v128_v40  ;;  %v376_v45 = vpop.f32.mrb[3].mxu1 }
 0x1d7   :  { %238 = vst.msk [vmem:[#allocation2 + $0x8] sm:$0xff] %vm31_vm0, %v236_v44 }
 0x1dc   :  { %v242_v48 = vld [vmem:[#allocation2] sm:$0xff] }
 0x1dd   :  { %v251_v49 = vadd.f32 %v330_v46, %v242_v48 }
 0x1de   :  { %v243_v51 = vld [vmem:[#allocation2 + $0x8] sm:$0xff] }
 0x1df   :  { %v255_v52 = vadd.f32 %v253_v47, %v251_v49  ;;  %v252_v53 = vadd.f32 %v330_v46, %v243_v51 }
 0x1e1   :  { %v257_v54 = vsel %vm31_vm0, %v255_v52, 0.0  ;;  %v256_v55 = vadd.f32 %v254_v50, %v252_v53 }
 0x1e2   :  { %258 = vadd.xlane.f32.xlu0 %v257_v54 }
 0x1e3   :  { %v260_v56 = vsel %vm31_vm0, %v256_v55, 0.0 }
 0x1e6   :  { %261 = vadd.xlane.f32.xlu0 %v260_v56 }
 0x26f   :  { %v259_v57 = vpop.xlane.xlu0 %258 }
 0x270   :  { %v264_v58 = vmul.f32 0.03125, %v259_v57 }
 0x272   :  { %v266_v59 = vsub.f32 %v255_v52, %v264_v58 }
 0x273   :  { %v262_v60 = vpop.xlane.xlu0 %261 }
 0x274   :  { %v265_v61 = vmul.f32 0.03125, %v262_v60  ;;  %v268_v62 = vmul.f32 %v266_v59, %v266_v59 }
 0x276   :  { %v267_v63 = vsub.f32 %v256_v55, %v265_v61  ;;  %v270_v0 = vsel %vm31_vm0, %v268_v62, 0.0 }
 0x277   :  { %271 = vadd.xlane.f32.xlu1 %v270_v0 }
 0x278   :  { %v269_v1 = vmul.f32 %v267_v63, %v267_v63 }
 0x27a   :  { %v273_v2 = vsel %vm31_vm0, %v269_v1, 0.0 }
 0x27b   :  { %274 = vadd.xlane.f32.xlu1 %v273_v2 }
 0x304   :  { %v272_v3 = vpop.xlane.xlu1 %271 }
 0x305   :  { %v276_v4 = vmul.f32 0.03125, %v272_v3 }
 0x307   :  { %v278_v5 = vadd.f32 1e-12, %v276_v4 }
 0x308   :  { %v275_v6 = vpop.xlane.xlu1 %274 }
 0x309   :  { %395 = vrsqrt.f32 %v278_v5  ;;  %v277_v7 = vmul.f32 0.03125, %v275_v6 }
 0x30b   :  { %v279_v8 = vadd.f32 1e-12, %v277_v7 }
 0x30d   :  { %397 = vrsqrt.f32 %v279_v8 }
 0x313   :  { %v396_v9 = vpop.eup %395 }
 0x314   :  { %v282_v11 = vmul.f32 %v396_v9, %v266_v59 }
 0x316   :  { %v291_v13 = vmul.f32 %v331_v10, %v282_v11 }
 0x317   :  { %v398_v14 = vpop.eup %397 }
 0x318   :  { %v300_v15 = vadd.f32 %v332_v12, %v291_v13  ;;  %v283_v16 = vmul.f32 %v398_v14, %v267_v63 }
 0x31a   :  { %v335_v17 = vpack.c.bf16 %v300_v15, %v300_v15  ;;  %v292_v18 = vmul.f32 %v331_v10, %v283_v16 }
 0x31c   :  { %311 = vst.msk [vmem:[%s513_s7] sm:$0xf] %vm310_vm2, %v335_v17  ;;  %v301_v19 = vadd.f32 %v332_v12, %v292_v18 }
 0x31e   :  { %v336_v20 = vpack.c.bf16 %v301_v19, %v301_v19 }
 0x320   :  { %312 = vst.msk [vmem:[%s513_s7 + $0x4] sm:$0xf] %vm310_vm2, %v336_v20 }

// kernel: sft_forward.15
= control target key start
LH: loop header
LB: loop body
LE: loop exit
PB: predicated region body
PF: predicated region fallthrough
CT: control target
= control target key end

     0   :  { %v242_v0 = vmov 0.0   ;;  %vm243_vm0 = vmmov 0   ;;  %vm59_vm1 = vcmask 261120   ;;  %v244_v4 = vmov 0   ;;  %s318_s1 = inlined_call_operand.vmem [shape: bf16[32,128], index: 1, kind: input, shape index: {}]   ;;  %s319_s0 = inlined_call_operand.vmem [shape: bf16[16,32], index: 0, kind: input, shape index: {}]   ;;  %s320_s2 = inlined_call_operand.vmem [shape: f32[1,128], index: 2, kind: input, shape index: {}]   ;;  %s321_s3 = inlined_call_operand.vmem [shape: s32[16,1], index: 3, kind: input, shape index: {}]   ;;  %s322_s4 = inlined_call_operand.vmem [shape: f32[16,1], index: 4, kind: output, shape index: {}]  }
   0x1   :  { %213 = vmatprep.subr.bf16.mxu0 %v242_v0  ;;  %v227_v1 = vld [vmem:[%s318_s1] sm:$0xff]   ;;  %217 = vmatprep.mubr.msk.bf16.mxu0 %vm243_vm0, %v242_v0  ;;  %v228_v2 = vld [vmem:[%s318_s1 + $0x8] sm:$0xff]   ;;  %vm22_vm2 = vcmask 7168   ;;  %v245_v5 = vmov -inf   ;;  %v105_v21 = vlaneseq }
   0x2   :  { %214 = vmatpush3.bf16.msra.mxu0 %v227_v1  ;;  %v229_v3 = vld [vmem:[%s319_s0] sm:$0xff]   ;;  %226 = vset.pattern.permute.xlu0 %v244_v4  ;;  %23 = vst.msk [vmem:[#allocation2] sm:$0xff] %vm22_vm2, %v245_v5  ;;  %24 = vst.msk [vmem:[#allocation2 + $0x8] sm:$0xff] %vm22_vm2, %v245_v5  ;;  %v110_v23 = vld [vmem:[%s321_s3 + $0x8] sm:$0xff] }
   0x3   :  { %215 = vmatprep.subr.bf16.mxu0 %v242_v0  ;;  %225 = vset.pattern.permute.xlu1 %v244_v4  ;;  %25 = vst.msk [vmem:[#allocation3] sm:$0xff] %vm22_vm2, %v242_v0  ;;  %26 = vst.msk [vmem:[#allocation3 + $0x8] sm:$0xff] %vm22_vm2, %v242_v0  ;;  %v203_v6 = vld [vmem:[%s320_s2] ss:$0 sm:$0xff]  ;;  %v106_v24 = vand.u32 127, %v105_v21 }
   0x4   :  { %27 = vst.msk [vmem:[#allocation4] sm:$0xff] %vm22_vm2, %v242_v0  ;;  %28 = vst.msk [vmem:[#allocation4 + $0x8] sm:$0xff] %vm22_vm2, %v242_v0  ;;  %v109_v13 = vld [vmem:[%s321_s3] sm:$0xff] }
   0x6   :  { %216 = vmatpush3.bf16.msra.mxu0 %v228_v2 }
   0x9   :  { %218 = vmatmul.mubr.msk.bf16.vlgmr.msra.gmra.mrb[0].mxu0 %vm59_vm1, %v229_v3  ;;  %v136_v14 = vld [vmem:[#allocation2] sm:$0xff]  ;;  %v137_v17 = vld [vmem:[#allocation2 + $0x8] sm:$0xff] }
   0xa   :  { %v144_v45 = vld [vmem:[#allocation3] sm:$0xff]  ;;  %v145_v49 = vld [vmem:[#allocation3 + $0x8] sm:$0xff] }
   0xb   :  { %v123_v39 = vld [vmem:[#allocation4] sm:$0xff]  ;;  %v124_v54 = vld [vmem:[#allocation4 + $0x8] sm:$0xff] }
  0xdc   :  { %v97_v7 = vpop.f32.mrb[0].mxu0 }
  0xdd   :  { %v98_v8 = vadd.f32 %v203_v6, %v97_v7  ;;  %v219_v9 = vpop.f32.mrb[1].mxu0 }
  0xde   :  { %v100_v10 = vpop.f32.mrb[2].mxu0 }
  0xdf   :  { %138 = vmax.xlane.f32.xlu0 %v98_v8  ;;  %v220_v11 = vpop.f32.mrb[3].mxu0  ;;  %v101_v12 = vadd.f32 %v203_v6, %v100_v10 }
  0xe3   :  { %140 = vmax.xlane.f32.xlu0 %v101_v12 }
  0xf9   :  { %112 = vperm.xlu0 %226, %v109_v13  }
 0x16c   :  { %v139_v15 = vpop.xlane.xlu0 %138 }
 0x16d   :  { %v142_v16 = vmax.f32 %v136_v14, %v139_v15 }
 0x16f   :  { %v146_v18 = vsub.f32 %v136_v14, %v142_v16  ;;  %178 = vst.msk [vmem:[#allocation2] sm:$0xff] %vm22_vm2, %v142_v16  ;;  %156 = vperm.xlu1 %225, %v142_v16  }
 0x170   :  { %v141_v19 = vpop.xlane.xlu0 %140 }
 0x171   :  { %v143_v20 = vmax.f32 %v137_v17, %v141_v19  ;;  %v148_v42 = vmul.f32 1.442695, %v146_v18 }
 0x173   :  { %v147_v22 = vsub.f32 %v137_v17, %v143_v20  ;;  %179 = vst.msk [vmem:[#allocation2 + $0x8] sm:$0xff] %vm22_vm2, %v143_v20  ;;  %161 = vperm.xlu1 %225, %v143_v20  }
 0x175   :  { %v150_v43 = vmul.f32 1.442695, %v147_v22 }
 0x176   :  { %v183_v61 = vld [vmem:[#allocation2] sm:$0xff] }
 0x177   :  { %115 = vperm.xlu1 %225, %v110_v23  }
 0x178   :  { %v113_v25 = vpop.permute.xlu0 %112 }
 0x179   :  { %vm117_vm3 = vcmp.eq.s32.totalorder %v106_v24, %v113_v25 }
 0x17a   :  { %v208_v26 = vsel %vm117_vm3, 1.0, %v242_v0  ;;  %v184_v3 = vld [vmem:[#allocation2 + $0x8] sm:$0xff] }
 0x17b   :  { %v125_v27 = vmul.f32 %v208_v26, %v98_v8 }
 0x17d   :  { %127 = vadd.xlane.f32.xlu0 %v125_v27 }
 0x1ee   :  { %v157_v28 = vpop.permute.xlu1 %156 }
 0x1ef   :  { %v164_v29 = vsub.f32 %v98_v8, %v157_v28 }
 0x1f1   :  { %v166_v30 = vmul.f32 1.442695, %v164_v29 }
 0x1f2   :  { %v162_v31 = vpop.permute.xlu1 %161 }
 0x1f3   :  { %230 = vpow2.f32 %v166_v30  ;;  %v165_v32 = vsub.f32 %v101_v12, %v162_v31 }
 0x1f5   :  { %v168_v33 = vmul.f32 1.442695, %v165_v32 }
 0x1f6   :  { %v116_v34 = vpop.permute.xlu1 %115 }
 0x1f7   :  { %232 = vpow2.f32 %v168_v33  ;;  %vm118_vm4 = vcmp.eq.s32.totalorder %v106_v24, %v116_v34 }
 0x1f8   :  { %v209_v37 = vsel %vm118_vm4, 1.0, %v242_v0  ;;  %234 = vpow2.f32 %v148_v42 }
 0x1f9   :  { %v126_v38 = vmul.f32 %v209_v37, %v101_v12  ;;  %236 = vpow2.f32 %v150_v43 }
 0x1fd   :  { %v231_v35 = vpop.eup %230 }
 0x1fe   :  { %170 = vadd.xlane.f32.xlu1 %v231_v35 }
 0x201   :  { %v233_v36 = vpop.eup %232 }
 0x202   :  { %172 = vadd.xlane.f32.xlu1 %v233_v36  ;;  %v235_v44 = vpop.eup %234 }
 0x203   :  { %v152_v46 = vmul.f32 %v235_v44, %v144_v45  ;;  %v237_v47 = vpop.eup %236 }
 0x204   :  { %v153_v51 = vmul.f32 %v237_v47, %v145_v49 }
 0x206   :  { %129 = vadd.xlane.f32.xlu1 %v126_v38 }
 0x20a   :  { %v128_v40 = vpop.xlane.xlu0 %127 }
 0x20b   :  { %v131_v41 = vadd.f32 %v128_v40, %v123_v39 }
 0x20d   :  { %134 = vst.msk [vmem:[#allocation4] sm:$0xff] %vm22_vm2, %v131_v41 }
 0x214   :  { %v193_v0 = vld [vmem:[#allocation4] sm:$0xff] }
 0x28b   :  { %v171_v48 = vpop.xlane.xlu1 %170 }
 0x28c   :  { %v174_v50 = vadd.f32 %v171_v48, %v152_v46 }
 0x28e   :  { %176 = vst.msk [vmem:[#allocation3] sm:$0xff] %vm22_vm2, %v174_v50 }
 0x28f   :  { %v173_v52 = vpop.xlane.xlu1 %172 }
 0x290   :  { %v175_v53 = vadd.f32 %v173_v52, %v153_v51 }
 0x292   :  { %177 = vst.msk [vmem:[#allocation3 + $0x8] sm:$0xff] %vm22_vm2, %v175_v53 }
 0x293   :  { %v130_v55 = vpop.xlane.xlu1 %129 }
 0x294   :  { %v132_v56 = vadd.f32 %v130_v55, %v124_v54 }
 0x295   :  { %v185_v57 = vld [vmem:[#allocation3] sm:$0xff] }
 0x296   :  { %238 = vlog2.f32 %v185_v57  ;;  %135 = vst.msk [vmem:[#allocation4 + $0x8] sm:$0xff] %vm22_vm2, %v132_v56 }
 0x299   :  { %v186_v58 = vld [vmem:[#allocation3 + $0x8] sm:$0xff] }
 0x29a   :  { %240 = vlog2.f32 %v186_v58 }
 0x29d   :  { %v194_v5 = vld [vmem:[#allocation4 + $0x8] sm:$0xff] }
 0x2a0   :  { %v239_v59 = vpop.eup %238 }
 0x2a1   :  { %v188_v60 = vmul.f32 0.6931472, %v239_v59 }
 0x2a3   :  { %v191_v62 = vadd.f32 %v188_v60, %v183_v61 }
 0x2a4   :  { %v241_v63 = vpop.eup %240 }
 0x2a5   :  { %v195_v1 = vsub.f32 %v191_v62, %v193_v0  ;;  %v190_v2 = vmul.f32 0.6931472, %v241_v63 }
 0x2a7   :  { %v192_v4 = vadd.f32 %v190_v2, %v184_v3  ;;  %197 = vst.msk [vmem:[%s322_s4] sm:$0xff] %vm22_vm2, %v195_v1 }
 0x2a9   :  { %v196_v6 = vsub.f32 %v192_v4, %v194_v5 }
 0x2ab   :  { %198 = vst.msk [vmem:[%s322_s4 + $0x8] sm:$0xff] %vm22_vm2, %v196_v6 }

// kernel: squeeze.3
= control target key start
LH: loop header
LB: loop body
LE: loop exit
PB: predicated region body
PF: predicated region fallthrough
CT: control target
= control target key end

     0   :  { %vm7_vm0 = vcmask 64512   ;;  %s39_s0 = inlined_call_operand.vmem [shape: f32[16], index: 0, kind: input, shape index: {}]   ;;  %s40_s1 = inlined_call_operand.vmem [shape: f32[2,8], index: 1, kind: output, shape index: {}]  }
   0x1   :  { %v4_v0 = vld [vmem:[%s39_s0] sm:$0x1]  ;;  %s22_s0 = smov 120  }
   0x2   :  { %5 = vst [vmem:[#allocation1] sm:$0x1] %v4_v0 }
   0x9   :  { %v9_v1 = vld [vmem:[#allocation1] sm:$0x1]  }
   0xa   :  { %v6_v2 = vld [vmem:[#allocation1] sm:$0x1]   ;;  %10 = vrot.lane.b32.xlu0 %v9_v1, %s22_s0 }
   0xb   :  { %8 = vst.msk [vmem:[#allocation0] sm:$0x1] %vm7_vm0, %v6_v2  }
  0x7c   :  { %v11_v3 = vpop.permute.xlu0 %10  }
  0x7d   :  { %14 = vst.msk [vmem:[#allocation0 + $0x1] sm:$0x1] %vm7_vm0, %v11_v3  }
  0x84   :  { %v18_v4 = vld [vmem:[#allocation0] sm:$0x3] }
  0x85   :  { %20 = vst [vmem:[%s40_s1] sm:$0x3] %v18_v4 }

</bundles_post_ra>
